<compile_context>
chip_gen: v5e
topology: v5e:2x2
jax: 0.10.0
libtpu: 0.0.40
codegen_flags: <defaults>
</compile_context>

<pallas_src>
import numpy as np
import jax
import jax.numpy as jnp
from jax.experimental import pallas as pl
from jax.experimental.pallas import tpu as pltpu


def _round_up(x, m):
    return (x + m - 1) // m * m


# --------------------------- conv + relu + pool -----------------------------

def conv_relu_pool_layer(a, w_big, bias):
    """Conv2d(k=5, s=1, p=2) + ReLU + MaxPool2d(2) as ONE fused Pallas kernel.

    a:     (C_in, B, H, W) activations (f32 or bf16), H and W even.
    w_big: (9, 4*C_out, K_pad) bf16 prepared weight (see prepare_params);
           entry dh*3+dw holds the (pool-slab x channel-parity) expansion of
           the 5x5 kernel for in-plane shift (dh, dw).
    bias:  (C_out,) f32.
    Returns (C_out, B, H//2, W//2) bf16.
    """
    C_in, B, H, W = a.shape
    assert H % 2 == 0 and W % 2 == 0, "even spatial dims assumed (28->14->7)"
    n_shift, C_out4, K_pad = w_big.shape
    assert n_shift == 9
    C_out = C_out4 // 4

    Hp2, Wp2 = (H + 4) // 2, (W + 4) // 2        # padded, half resolution
    Ho, Wo = H // 2, W // 2
    Qp = Hp2 * Wp2                               # real flat length per image
    L = _round_up(Qp, 128)                       # lane-aligned segment/image
    assert 2 * Wp2 + 2 <= 128                    # max shift fits in the halo

    # Batch tiling: >=2 grid steps whenever B>=2 (v7x megacore), <=32 img/step.
    tb = min(32, B // 2) if B >= 2 else 1
    B_pad = _round_up(B, tb)
    n = B_pad * L
    tbl = tb * L

    # ---- glue (1x traffic): zero-pad + parity (space-to-depth) relayout ----
    ap = jnp.pad(a.astype(jnp.bfloat16),
                 ((0, 0), (0, B_pad - B), (2, 2), (2, 2)))
    xp = ap.reshape(C_in, B_pad, Hp2, 2, Wp2, 2)
    xp = jnp.transpose(xp, (3, 5, 0, 1, 2, 4))       # (2,2,C_in,B_pad,Hp2,Wp2)
    xp = xp.reshape(4 * C_in, B_pad, Qp)
    xp = jnp.pad(xp, ((0, K_pad - 4 * C_in), (0, 0), (0, L - Qp)))
    xp = xp.reshape(K_pad, n)

    b2 = bias.reshape(C_out, 1).astype(jnp.float32)

    def kernel(x_ref, w_ref, b_ref, o_ref):
        x = x_ref[...]                                        # (K_pad, tbl)
        # 128-lane zero halo so every shifted window is a plain static slice;
        # halo / cross-image reads only land on invalid (dropped) columns.
        halo = jnp.zeros((K_pad, 128), x.dtype)
        xx = jnp.concatenate([x, halo], axis=1)
        acc = None
        for dh in range(3):
            for dw in range(3):
                s = dh * Wp2 + dw
                xs = x if s == 0 else xx[:, s:s + tbl]
                prod = jnp.dot(w_ref[dh * 3 + dw], xs,
                               preferred_element_type=jnp.float32)
                acc = prod if acc is None else acc + prod
        # 2x2 max-pool == max over the 4 slab row-groups; then
        # maxpool(relu(z+b)) == relu(max(z)+b) (bias const / ReLU monotone).
        m = jnp.maximum(jnp.maximum(acc[0:C_out], acc[C_out:2 * C_out]),
                        jnp.maximum(acc[2 * C_out:3 * C_out],
                                    acc[3 * C_out:4 * C_out]))
        o_ref[...] = jnp.maximum(m + b_ref[...], 0.0).astype(o_ref.dtype)

    flops = 2 * 9 * C_out4 * K_pad * n
    bytes_accessed = (xp.size * 2 + w_big.size * 2 + b2.size * 4
                      + C_out * n * 2)

    out = pl.pallas_call(
        kernel,
        out_shape=jax.ShapeDtypeStruct((C_out, n), jnp.bfloat16),
        grid=(n // tbl,),
        in_specs=[
            pl.BlockSpec((K_pad, tbl), lambda j: (0, j)),     # streamed acts
            pl.BlockSpec((9, C_out4, K_pad), lambda j: (0, 0, 0)),  # resident
            pl.BlockSpec((C_out, 1), lambda j: (0, 0)),             # resident
        ],
        out_specs=pl.BlockSpec((C_out, tbl), lambda j: (0, j)),
        compiler_params=pltpu.CompilerParams(
            dimension_semantics=("parallel",)),
        cost_estimate=pl.CostEstimate(flops=flops, transcendentals=0,
                                      bytes_accessed=bytes_accessed),
    )(xp, w_big, b2)

    # Drop padded batch images, per-image spatial slack and invalid columns.
    out = out.reshape(C_out, B_pad, L)[:, :B, :Qp]
    out = out.reshape(C_out, B, Hp2, Wp2)[:, :, :Ho, :Wo]
    return out


# --------------------------------- linear -----------------------------------

def _linear_kernel(x_ref, w_ref, b_ref, o_ref):
    acc = jnp.dot(x_ref[...], w_ref[...], preferred_element_type=jnp.float32)
    o_ref[...] = (acc + b_ref[...]).astype(o_ref.dtype)


def linear_layer(x, w, b, *, max_tile_b=512):
    """x: (B, K) -> (B, N_pad) f32.  w: (K, N_pad) bf16, b: (1, N_pad) f32."""
    B, K = x.shape
    N = w.shape[1]
    tb = min(max_tile_b, _round_up(B, 16))
    B_pad = _round_up(B, tb)
    xp = jnp.pad(x.astype(jnp.bfloat16), ((0, B_pad - B), (0, 0)))
    flops = 2 * B_pad * K * N
    bytes_accessed = xp.size * 2 + w.size * 2 + b.size * 4 + B_pad * N * 4
    out = pl.pallas_call(
        _linear_kernel,
        out_shape=jax.ShapeDtypeStruct((B_pad, N), jnp.float32),
        grid=(B_pad // tb,),
        in_specs=[pl.BlockSpec((tb, K), lambda j: (j, 0)),
                  pl.BlockSpec((K, N), lambda j: (0, 0)),     # resident weight
                  pl.BlockSpec((1, N), lambda j: (0, 0))],    # resident bias
        out_specs=pl.BlockSpec((tb, N), lambda j: (j, 0)),
        compiler_params=pltpu.CompilerParams(
            dimension_semantics=("parallel",)),
        cost_estimate=pl.CostEstimate(flops=flops, transcendentals=0,
                                      bytes_accessed=bytes_accessed),
    )(xp, w, b)
    return out[:B]


# ------------------------------ forward pass --------------------------------

def cnn_forward(x, params):
    """x: (B, 1, 28, 28) f32 NCHW. Returns (B, 10) f32 logits."""
    B = x.shape[0]
    a = jnp.transpose(x, (1, 0, 2, 3))                        # (1, B, 28, 28)
    a = conv_relu_pool_layer(a, params["w1"], params["b1"])   # (16, B, 14, 14)
    a = conv_relu_pool_layer(a, params["w2"], params["b2"])   # (32, B, 7, 7)
    # flatten exactly like torch's x.view(B, -1) on NCHW:
    feat = jnp.transpose(a, (1, 0, 2, 3)).reshape(B, -1)      # (B, 1568) bf16
    logits = linear_layer(feat, params["wo"], params["bo"])
    return logits[:, :10]


# ------------------------------ parameters ----------------------------------

def init_params(key):
    """Torch-layout params; uniform(-1/sqrt(fan_in), 1/sqrt(fan_in)) like torch."""
    k1, k2, k3, k4, k5, k6 = jax.random.split(key, 6)

    def u(k, shape, fan_in):
        bound = 1.0 / jnp.sqrt(jnp.float32(fan_in))
        return jax.random.uniform(k, shape, jnp.float32, -bound, bound)

    return {
        "w1": u(k1, (16, 1, 5, 5), 1 * 25),
        "b1": u(k2, (16,), 1 * 25),
        "w2": u(k3, (32, 16, 5, 5), 16 * 25),
        "b2": u(k4, (32,), 16 * 25),
        "wo": u(k5, (10, 32 * 7 * 7), 32 * 7 * 7),
        "bo": u(k6, (10,), 32 * 7 * 7),
    }


def prepare_params(tp):
    """One-time host-side conversion of torch-layout params into the layouts
    the Pallas kernels consume (parity/shift-expanded bf16 conv weights,
    pre-transposed N-padded Linear weights)."""

    def conv_w_big(w):
        w = np.asarray(jax.device_get(w), dtype=np.float32)   # (C_out,C_in,5,5)
        C_out, C_in, k, _ = w.shape
        K_pad = _round_up(4 * C_in, 8)
        wb = np.zeros((9, 4 * C_out, K_pad), np.float32)
        # pool slab (ph,pw), kernel tap (kh,kw) -> parity plane (a,b) and
        # in-plane half-res shift (dh,dw):  2*oh+ph+kh == 2*(oh+dh)+a, etc.
        for ph in range(2):
            for pw in range(2):
                p = ph * 2 + pw
                for kh in range(k):
                    for kw in range(k):
                        a_par, dh = (ph + kh) % 2, (ph + kh) // 2
                        b_par, dw = (pw + kw) % 2, (pw + kw) // 2
                        col = (a_par * 2 + b_par) * C_in
                        wb[dh * 3 + dw,
                           p * C_out:(p + 1) * C_out,
                           col:col + C_in] = w[:, :, kh, kw]
        return jnp.asarray(wb, dtype=jnp.bfloat16)

    wo = tp["wo"]                                   # (10, 1568)
    N_out = wo.shape[0]
    N_pad = _round_up(N_out, 128)
    wo_t = jnp.pad(wo.T, ((0, 0), (0, N_pad - N_out))).astype(jnp.bfloat16)
    bo = jnp.pad(tp["bo"], (0, N_pad - N_out)).astype(jnp.float32)

    return {
        "w1": conv_w_big(tp["w1"]), "b1": tp["b1"].astype(jnp.float32),
        "w2": conv_w_big(tp["w2"]), "b2": tp["b2"].astype(jnp.float32),
        "wo": wo_t, "bo": bo.reshape(1, N_pad),
    }


# ------------------------------ reference -----------------------------------

def _reference_forward(x, tp):
    """Pure-JAX reference (matmul inputs rounded to bf16 like the kernels)."""
    def q(v):
        return v.astype(jnp.bfloat16).astype(jnp.float32)

    def conv_block(a, w, b):
        y = jax.lax.conv_general_dilated(
            q(a), q(w), window_strides=(1, 1), padding=((2, 2), (2, 2)),
            dimension_numbers=("NCHW", "OIHW", "NCHW"))
        y = jnp.maximum(y + b[None, :, None, None], 0.0)
        B_, C_, H_, W_ = y.shape
        return y.reshape(B_, C_, H_ // 2, 2, W_ // 2, 2).max(axis=(3, 5))

    a = conv_block(x, tp["w1"], tp["b1"])
    a = conv_block(a, tp["w2"], tp["b2"])
    feat = a.reshape(a.shape[0], -1)
    return q(feat) @ q(tp["wo"]).T + tp["bo"]


if __name__ == "__main__":
    key = jax.random.PRNGKey(0)
    pkey, xkey = jax.random.split(key)
    torch_params = init_params(pkey)
    params = prepare_params(torch_params)
    # MNIST-shaped input is required by the 32*7*7 Linear: (B, 1, 28, 28).
    x = jax.random.normal(xkey, (2, 1, 28, 28), jnp.float32)
    out = jax.jit(cnn_forward)(x, params)
    out = jax.block_until_ready(out)
    assert out.shape == (2, 10) and out.dtype == jnp.float32
    ref = _reference_forward(x, torch_params)
    assert float(jnp.max(jnp.abs(out - ref))) < 2e-2, "mismatch vs reference"
    print("KERNEL_OK")
</pallas_src>

<mosaic_0001>
module attributes {stable_mosaic.version = 11 : i64} {
  func.func @kernel(%arg0: i32, %arg1: memref<8x256xbf16, #tpu.memory_space<vmem>>, %arg2: memref<9x64x8xbf16, #tpu.memory_space<vmem>>, %arg3: memref<16x1xf32, #tpu.memory_space<vmem>>, %arg4: memref<16x256xbf16, #tpu.memory_space<vmem>>) attributes {dimension_semantics = [#tpu.dimension_semantics<parallel>], iteration_bounds = array<i64: 2>, scalar_prefetch = 0 : i64, scratch_operands = 0 : i64, tpu.core_type = #tpu.core_type<tc>, window_params = [{transform_indices = @transform_0, window_bounds = array<i64: 8, 256>}, {pipeline_mode = #tpu.pipeline_mode<synchronous>, transform_indices = @transform_1, window_bounds = array<i64: 9, 64, 8>}, {pipeline_mode = #tpu.pipeline_mode<synchronous>, transform_indices = @transform_2, window_bounds = array<i64: 16, 1>}, {transform_indices = @transform_3, window_bounds = array<i64: 16, 256>}]} {
    %c0 = arith.constant 0 : index
    %c0_0 = arith.constant 0 : index
    %0 = vector.load %arg1[%c0, %c0_0] : memref<8x256xbf16, #tpu.memory_space<vmem>>, vector<8x256xbf16>
    %cst = arith.constant 0.000000e+00 : bf16
    %1 = vector.broadcast %cst : bf16 to vector<8x128xbf16>
    %2 = tpu.concatenate %0, %1 in 1 : vector<8x256xbf16>, vector<8x128xbf16> -> vector<8x384xbf16>
    %c0_1 = arith.constant 0 : index
    %c0_2 = arith.constant 0 : index
    %c0_3 = arith.constant 0 : index
    %3 = vector.load %arg2[%c0_1, %c0_2, %c0_3] : memref<9x64x8xbf16, #tpu.memory_space<vmem>>, vector<1x64x8xbf16>
    %4 = vector.shape_cast %3 : vector<1x64x8xbf16> to vector<64x8xbf16>
    %cst_4 = arith.constant dense<0.000000e+00> : vector<64x256xf32>
    %5 = tpu.matmul %4, %0, %cst_4 {dimension_numbers = #tpu.dot_dimension_numbers<[1], [0], [0], [1], [0, 0, 1, 1], [], []>} : vector<64x8xbf16>, vector<8x256xbf16>, vector<64x256xf32> -> vector<64x256xf32>
    %6 = vector.extract_strided_slice %2 {offsets = [0, 1], sizes = [8, 256], strides = [1, 1]} : vector<8x384xbf16> to vector<8x256xbf16>
    %c1 = arith.constant 1 : index
    %c0_5 = arith.constant 0 : index
    %c0_6 = arith.constant 0 : index
    %7 = vector.load %arg2[%c1, %c0_5, %c0_6] : memref<9x64x8xbf16, #tpu.memory_space<vmem>>, vector<1x64x8xbf16>
    %8 = vector.shape_cast %7 : vector<1x64x8xbf16> to vector<64x8xbf16>
    %cst_7 = arith.constant dense<0.000000e+00> : vector<64x256xf32>
    %9 = tpu.matmul %8, %6, %cst_7 {dimension_numbers = #tpu.dot_dimension_numbers<[1], [0], [0], [1], [0, 0, 1, 1], [], []>} : vector<64x8xbf16>, vector<8x256xbf16>, vector<64x256xf32> -> vector<64x256xf32>
    %10 = arith.addf %5, %9 : vector<64x256xf32>
    %11 = vector.extract_strided_slice %2 {offsets = [0, 2], sizes = [8, 256], strides = [1, 1]} : vector<8x384xbf16> to vector<8x256xbf16>
    %c2 = arith.constant 2 : index
    %c0_8 = arith.constant 0 : index
    %c0_9 = arith.constant 0 : index
    %12 = vector.load %arg2[%c2, %c0_8, %c0_9] : memref<9x64x8xbf16, #tpu.memory_space<vmem>>, vector<1x64x8xbf16>
    %13 = vector.shape_cast %12 : vector<1x64x8xbf16> to vector<64x8xbf16>
    %cst_10 = arith.constant dense<0.000000e+00> : vector<64x256xf32>
    %14 = tpu.matmul %13, %11, %cst_10 {dimension_numbers = #tpu.dot_dimension_numbers<[1], [0], [0], [1], [0, 0, 1, 1], [], []>} : vector<64x8xbf16>, vector<8x256xbf16>, vector<64x256xf32> -> vector<64x256xf32>
    %15 = arith.addf %10, %14 : vector<64x256xf32>
    %16 = vector.extract_strided_slice %2 {offsets = [0, 16], sizes = [8, 256], strides = [1, 1]} : vector<8x384xbf16> to vector<8x256xbf16>
    %c3 = arith.constant 3 : index
    %c0_11 = arith.constant 0 : index
    %c0_12 = arith.constant 0 : index
    %17 = vector.load %arg2[%c3, %c0_11, %c0_12] : memref<9x64x8xbf16, #tpu.memory_space<vmem>>, vector<1x64x8xbf16>
    %18 = vector.shape_cast %17 : vector<1x64x8xbf16> to vector<64x8xbf16>
    %cst_13 = arith.constant dense<0.000000e+00> : vector<64x256xf32>
    %19 = tpu.matmul %18, %16, %cst_13 {dimension_numbers = #tpu.dot_dimension_numbers<[1], [0], [0], [1], [0, 0, 1, 1], [], []>} : vector<64x8xbf16>, vector<8x256xbf16>, vector<64x256xf32> -> vector<64x256xf32>
    %20 = arith.addf %15, %19 : vector<64x256xf32>
    %21 = vector.extract_strided_slice %2 {offsets = [0, 17], sizes = [8, 256], strides = [1, 1]} : vector<8x384xbf16> to vector<8x256xbf16>
    %c4 = arith.constant 4 : index
    %c0_14 = arith.constant 0 : index
    %c0_15 = arith.constant 0 : index
    %22 = vector.load %arg2[%c4, %c0_14, %c0_15] : memref<9x64x8xbf16, #tpu.memory_space<vmem>>, vector<1x64x8xbf16>
    %23 = vector.shape_cast %22 : vector<1x64x8xbf16> to vector<64x8xbf16>
    %cst_16 = arith.constant dense<0.000000e+00> : vector<64x256xf32>
    %24 = tpu.matmul %23, %21, %cst_16 {dimension_numbers = #tpu.dot_dimension_numbers<[1], [0], [0], [1], [0, 0, 1, 1], [], []>} : vector<64x8xbf16>, vector<8x256xbf16>, vector<64x256xf32> -> vector<64x256xf32>
    %25 = arith.addf %20, %24 : vector<64x256xf32>
    %26 = vector.extract_strided_slice %2 {offsets = [0, 18], sizes = [8, 256], strides = [1, 1]} : vector<8x384xbf16> to vector<8x256xbf16>
    %c5 = arith.constant 5 : index
    %c0_17 = arith.constant 0 : index
    %c0_18 = arith.constant 0 : index
    %27 = vector.load %arg2[%c5, %c0_17, %c0_18] : memref<9x64x8xbf16, #tpu.memory_space<vmem>>, vector<1x64x8xbf16>
    %28 = vector.shape_cast %27 : vector<1x64x8xbf16> to vector<64x8xbf16>
    %cst_19 = arith.constant dense<0.000000e+00> : vector<64x256xf32>
    %29 = tpu.matmul %28, %26, %cst_19 {dimension_numbers = #tpu.dot_dimension_numbers<[1], [0], [0], [1], [0, 0, 1, 1], [], []>} : vector<64x8xbf16>, vector<8x256xbf16>, vector<64x256xf32> -> vector<64x256xf32>
    %30 = arith.addf %25, %29 : vector<64x256xf32>
    %31 = vector.extract_strided_slice %2 {offsets = [0, 32], sizes = [8, 256], strides = [1, 1]} : vector<8x384xbf16> to vector<8x256xbf16>
    %c6 = arith.constant 6 : index
    %c0_20 = arith.constant 0 : index
    %c0_21 = arith.constant 0 : index
    %32 = vector.load %arg2[%c6, %c0_20, %c0_21] : memref<9x64x8xbf16, #tpu.memory_space<vmem>>, vector<1x64x8xbf16>
    %33 = vector.shape_cast %32 : vector<1x64x8xbf16> to vector<64x8xbf16>
    %cst_22 = arith.constant dense<0.000000e+00> : vector<64x256xf32>
    %34 = tpu.matmul %33, %31, %cst_22 {dimension_numbers = #tpu.dot_dimension_numbers<[1], [0], [0], [1], [0, 0, 1, 1], [], []>} : vector<64x8xbf16>, vector<8x256xbf16>, vector<64x256xf32> -> vector<64x256xf32>
    %35 = arith.addf %30, %34 : vector<64x256xf32>
    %36 = vector.extract_strided_slice %2 {offsets = [0, 33], sizes = [8, 256], strides = [1, 1]} : vector<8x384xbf16> to vector<8x256xbf16>
    %c7 = arith.constant 7 : index
    %c0_23 = arith.constant 0 : index
    %c0_24 = arith.constant 0 : index
    %37 = vector.load %arg2[%c7, %c0_23, %c0_24] : memref<9x64x8xbf16, #tpu.memory_space<vmem>>, vector<1x64x8xbf16>
    %38 = vector.shape_cast %37 : vector<1x64x8xbf16> to vector<64x8xbf16>
    %cst_25 = arith.constant dense<0.000000e+00> : vector<64x256xf32>
    %39 = tpu.matmul %38, %36, %cst_25 {dimension_numbers = #tpu.dot_dimension_numbers<[1], [0], [0], [1], [0, 0, 1, 1], [], []>} : vector<64x8xbf16>, vector<8x256xbf16>, vector<64x256xf32> -> vector<64x256xf32>
    %40 = arith.addf %35, %39 : vector<64x256xf32>
    %41 = vector.extract_strided_slice %2 {offsets = [0, 34], sizes = [8, 256], strides = [1, 1]} : vector<8x384xbf16> to vector<8x256xbf16>
    %c8 = arith.constant 8 : index
    %c0_26 = arith.constant 0 : index
    %c0_27 = arith.constant 0 : index
    %42 = vector.load %arg2[%c8, %c0_26, %c0_27] : memref<9x64x8xbf16, #tpu.memory_space<vmem>>, vector<1x64x8xbf16>
    %43 = vector.shape_cast %42 : vector<1x64x8xbf16> to vector<64x8xbf16>
    %cst_28 = arith.constant dense<0.000000e+00> : vector<64x256xf32>
    %44 = tpu.matmul %43, %41, %cst_28 {dimension_numbers = #tpu.dot_dimension_numbers<[1], [0], [0], [1], [0, 0, 1, 1], [], []>} : vector<64x8xbf16>, vector<8x256xbf16>, vector<64x256xf32> -> vector<64x256xf32>
    %45 = arith.addf %40, %44 : vector<64x256xf32>
    %46 = vector.extract_strided_slice %45 {offsets = [0, 0], sizes = [16, 256], strides = [1, 1]} : vector<64x256xf32> to vector<16x256xf32>
    %47 = vector.extract_strided_slice %45 {offsets = [16, 0], sizes = [16, 256], strides = [1, 1]} : vector<64x256xf32> to vector<16x256xf32>
    %48 = arith.maximumf %46, %47 : vector<16x256xf32>
    %49 = vector.extract_strided_slice %45 {offsets = [32, 0], sizes = [16, 256], strides = [1, 1]} : vector<64x256xf32> to vector<16x256xf32>
    %50 = vector.extract_strided_slice %45 {offsets = [48, 0], sizes = [16, 256], strides = [1, 1]} : vector<64x256xf32> to vector<16x256xf32>
    %51 = arith.maximumf %49, %50 : vector<16x256xf32>
    %52 = arith.maximumf %48, %51 : vector<16x256xf32>
    %c0_29 = arith.constant 0 : index
    %c0_30 = arith.constant 0 : index
    %53 = vector.load %arg3[%c0_29, %c0_30] : memref<16x1xf32, #tpu.memory_space<vmem>>, vector<16x1xf32>
    %54 = vector.broadcast %53 : vector<16x1xf32> to vector<16x256xf32>
    %55 = arith.addf %52, %54 : vector<16x256xf32>
    %cst_31 = arith.constant 0.000000e+00 : f32
    %56 = vector.broadcast %cst_31 : f32 to vector<16x256xf32>
    %57 = arith.maximumf %55, %56 : vector<16x256xf32>
    %58 = arith.truncf %57 : vector<16x256xf32> to vector<16x256xbf16>
    %c0_32 = arith.constant 0 : index
    %c0_33 = arith.constant 0 : index
    %59 = vector.load %arg4[%c0_32, %c0_33] : memref<16x256xbf16, #tpu.memory_space<vmem>>, vector<16x256xbf16>
    tpu.vector_store %arg4[%c0_32, %c0_33], %58 {strides = array<i32>} : memref<16x256xbf16, #tpu.memory_space<vmem>>, vector<16x256xbf16>,
    return
  }
  func.func @transform_0(%arg0: i32) -> (i32, i32) {
    %c0_i32 = arith.constant 0 : i32
    %c0_i32_0 = arith.constant 0 : i32
    return %c0_i32, %arg0 : i32, i32
  }
  func.func @transform_1(%arg0: i32) -> (i32, i32, i32) {
    %c0_i32 = arith.constant 0 : i32
    %c0_i32_0 = arith.constant 0 : i32
    %c0_i32_1 = arith.constant 0 : i32
    %c0_i32_2 = arith.constant 0 : i32
    return %c0_i32, %c0_i32_0, %c0_i32_1 : i32, i32, i32
  }
  func.func @transform_2(%arg0: i32) -> (i32, i32) {
    %c0_i32 = arith.constant 0 : i32
    %c0_i32_0 = arith.constant 0 : i32
    %c0_i32_1 = arith.constant 0 : i32
    return %c0_i32, %c0_i32_0 : i32, i32
  }
  func.func @transform_3(%arg0: i32) -> (i32, i32) {
    %c0_i32 = arith.constant 0 : i32
    %c0_i32_0 = arith.constant 0 : i32
    return %c0_i32, %arg0 : i32, i32
  }
}

module attributes {stable_mosaic.version = 11 : i64} {
  func.func @kernel(%arg0: i32, %arg1: memref<64x128xbf16, #tpu.memory_space<vmem>>, %arg2: memref<9x128x64xbf16, #tpu.memory_space<vmem>>, %arg3: memref<32x1xf32, #tpu.memory_space<vmem>>, %arg4: memref<32x128xbf16, #tpu.memory_space<vmem>>) attributes {dimension_semantics = [#tpu.dimension_semantics<parallel>], iteration_bounds = array<i64: 2>, scalar_prefetch = 0 : i64, scratch_operands = 0 : i64, tpu.core_type = #tpu.core_type<tc>, window_params = [{transform_indices = @transform_0, window_bounds = array<i64: 64, 128>}, {pipeline_mode = #tpu.pipeline_mode<synchronous>, transform_indices = @transform_1, window_bounds = array<i64: 9, 128, 64>}, {pipeline_mode = #tpu.pipeline_mode<synchronous>, transform_indices = @transform_2, window_bounds = array<i64: 32, 1>}, {transform_indices = @transform_3, window_bounds = array<i64: 32, 128>}]} {
    %c0 = arith.constant 0 : index
    %c0_0 = arith.constant 0 : index
    %0 = vector.load %arg1[%c0, %c0_0] : memref<64x128xbf16, #tpu.memory_space<vmem>>, vector<64x128xbf16>
    %cst = arith.constant 0.000000e+00 : bf16
    %1 = vector.broadcast %cst : bf16 to vector<64x128xbf16>
    %2 = tpu.concatenate %0, %1 in 1 : vector<64x128xbf16>, vector<64x128xbf16> -> vector<64x256xbf16>
    %c0_1 = arith.constant 0 : index
    %c0_2 = arith.constant 0 : index
    %c0_3 = arith.constant 0 : index
    %3 = vector.load %arg2[%c0_1, %c0_2, %c0_3] : memref<9x128x64xbf16, #tpu.memory_space<vmem>>, vector<1x128x64xbf16>
    %4 = vector.shape_cast %3 : vector<1x128x64xbf16> to vector<128x64xbf16>
    %cst_4 = arith.constant dense<0.000000e+00> : vector<128x128xf32>
    %5 = tpu.matmul %4, %0, %cst_4 {dimension_numbers = #tpu.dot_dimension_numbers<[1], [0], [0], [1], [0, 0, 1, 1], [], []>} : vector<128x64xbf16>, vector<64x128xbf16>, vector<128x128xf32> -> vector<128x128xf32>
    %6 = vector.extract_strided_slice %2 {offsets = [0, 1], sizes = [64, 128], strides = [1, 1]} : vector<64x256xbf16> to vector<64x128xbf16>
    %c1 = arith.constant 1 : index
    %c0_5 = arith.constant 0 : index
    %c0_6 = arith.constant 0 : index
    %7 = vector.load %arg2[%c1, %c0_5, %c0_6] : memref<9x128x64xbf16, #tpu.memory_space<vmem>>, vector<1x128x64xbf16>
    %8 = vector.shape_cast %7 : vector<1x128x64xbf16> to vector<128x64xbf16>
    %cst_7 = arith.constant dense<0.000000e+00> : vector<128x128xf32>
    %9 = tpu.matmul %8, %6, %cst_7 {dimension_numbers = #tpu.dot_dimension_numbers<[1], [0], [0], [1], [0, 0, 1, 1], [], []>} : vector<128x64xbf16>, vector<64x128xbf16>, vector<128x128xf32> -> vector<128x128xf32>
    %10 = arith.addf %5, %9 : vector<128x128xf32>
    %11 = vector.extract_strided_slice %2 {offsets = [0, 2], sizes = [64, 128], strides = [1, 1]} : vector<64x256xbf16> to vector<64x128xbf16>
    %c2 = arith.constant 2 : index
    %c0_8 = arith.constant 0 : index
    %c0_9 = arith.constant 0 : index
    %12 = vector.load %arg2[%c2, %c0_8, %c0_9] : memref<9x128x64xbf16, #tpu.memory_space<vmem>>, vector<1x128x64xbf16>
    %13 = vector.shape_cast %12 : vector<1x128x64xbf16> to vector<128x64xbf16>
    %cst_10 = arith.constant dense<0.000000e+00> : vector<128x128xf32>
    %14 = tpu.matmul %13, %11, %cst_10 {dimension_numbers = #tpu.dot_dimension_numbers<[1], [0], [0], [1], [0, 0, 1, 1], [], []>} : vector<128x64xbf16>, vector<64x128xbf16>, vector<128x128xf32> -> vector<128x128xf32>
    %15 = arith.addf %10, %14 : vector<128x128xf32>
    %16 = vector.extract_strided_slice %2 {offsets = [0, 9], sizes = [64, 128], strides = [1, 1]} : vector<64x256xbf16> to vector<64x128xbf16>
    %c3 = arith.constant 3 : index
    %c0_11 = arith.constant 0 : index
    %c0_12 = arith.constant 0 : index
    %17 = vector.load %arg2[%c3, %c0_11, %c0_12] : memref<9x128x64xbf16, #tpu.memory_space<vmem>>, vector<1x128x64xbf16>
    %18 = vector.shape_cast %17 : vector<1x128x64xbf16> to vector<128x64xbf16>
    %cst_13 = arith.constant dense<0.000000e+00> : vector<128x128xf32>
    %19 = tpu.matmul %18, %16, %cst_13 {dimension_numbers = #tpu.dot_dimension_numbers<[1], [0], [0], [1], [0, 0, 1, 1], [], []>} : vector<128x64xbf16>, vector<64x128xbf16>, vector<128x128xf32> -> vector<128x128xf32>
    %20 = arith.addf %15, %19 : vector<128x128xf32>
    %21 = vector.extract_strided_slice %2 {offsets = [0, 10], sizes = [64, 128], strides = [1, 1]} : vector<64x256xbf16> to vector<64x128xbf16>
    %c4 = arith.constant 4 : index
    %c0_14 = arith.constant 0 : index
    %c0_15 = arith.constant 0 : index
    %22 = vector.load %arg2[%c4, %c0_14, %c0_15] : memref<9x128x64xbf16, #tpu.memory_space<vmem>>, vector<1x128x64xbf16>
    %23 = vector.shape_cast %22 : vector<1x128x64xbf16> to vector<128x64xbf16>
    %cst_16 = arith.constant dense<0.000000e+00> : vector<128x128xf32>
    %24 = tpu.matmul %23, %21, %cst_16 {dimension_numbers = #tpu.dot_dimension_numbers<[1], [0], [0], [1], [0, 0, 1, 1], [], []>} : vector<128x64xbf16>, vector<64x128xbf16>, vector<128x128xf32> -> vector<128x128xf32>
    %25 = arith.addf %20, %24 : vector<128x128xf32>
    %26 = vector.extract_strided_slice %2 {offsets = [0, 11], sizes = [64, 128], strides = [1, 1]} : vector<64x256xbf16> to vector<64x128xbf16>
    %c5 = arith.constant 5 : index
    %c0_17 = arith.constant 0 : index
    %c0_18 = arith.constant 0 : index
    %27 = vector.load %arg2[%c5, %c0_17, %c0_18] : memref<9x128x64xbf16, #tpu.memory_space<vmem>>, vector<1x128x64xbf16>
    %28 = vector.shape_cast %27 : vector<1x128x64xbf16> to vector<128x64xbf16>
    %cst_19 = arith.constant dense<0.000000e+00> : vector<128x128xf32>
    %29 = tpu.matmul %28, %26, %cst_19 {dimension_numbers = #tpu.dot_dimension_numbers<[1], [0], [0], [1], [0, 0, 1, 1], [], []>} : vector<128x64xbf16>, vector<64x128xbf16>, vector<128x128xf32> -> vector<128x128xf32>
    %30 = arith.addf %25, %29 : vector<128x128xf32>
    %31 = vector.extract_strided_slice %2 {offsets = [0, 18], sizes = [64, 128], strides = [1, 1]} : vector<64x256xbf16> to vector<64x128xbf16>
    %c6 = arith.constant 6 : index
    %c0_20 = arith.constant 0 : index
    %c0_21 = arith.constant 0 : index
    %32 = vector.load %arg2[%c6, %c0_20, %c0_21] : memref<9x128x64xbf16, #tpu.memory_space<vmem>>, vector<1x128x64xbf16>
    %33 = vector.shape_cast %32 : vector<1x128x64xbf16> to vector<128x64xbf16>
    %cst_22 = arith.constant dense<0.000000e+00> : vector<128x128xf32>
    %34 = tpu.matmul %33, %31, %cst_22 {dimension_numbers = #tpu.dot_dimension_numbers<[1], [0], [0], [1], [0, 0, 1, 1], [], []>} : vector<128x64xbf16>, vector<64x128xbf16>, vector<128x128xf32> -> vector<128x128xf32>
    %35 = arith.addf %30, %34 : vector<128x128xf32>
    %36 = vector.extract_strided_slice %2 {offsets = [0, 19], sizes = [64, 128], strides = [1, 1]} : vector<64x256xbf16> to vector<64x128xbf16>
    %c7 = arith.constant 7 : index
    %c0_23 = arith.constant 0 : index
    %c0_24 = arith.constant 0 : index
    %37 = vector.load %arg2[%c7, %c0_23, %c0_24] : memref<9x128x64xbf16, #tpu.memory_space<vmem>>, vector<1x128x64xbf16>
    %38 = vector.shape_cast %37 : vector<1x128x64xbf16> to vector<128x64xbf16>
    %cst_25 = arith.constant dense<0.000000e+00> : vector<128x128xf32>
    %39 = tpu.matmul %38, %36, %cst_25 {dimension_numbers = #tpu.dot_dimension_numbers<[1], [0], [0], [1], [0, 0, 1, 1], [], []>} : vector<128x64xbf16>, vector<64x128xbf16>, vector<128x128xf32> -> vector<128x128xf32>
    %40 = arith.addf %35, %39 : vector<128x128xf32>
    %41 = vector.extract_strided_slice %2 {offsets = [0, 20], sizes = [64, 128], strides = [1, 1]} : vector<64x256xbf16> to vector<64x128xbf16>
    %c8 = arith.constant 8 : index
    %c0_26 = arith.constant 0 : index
    %c0_27 = arith.constant 0 : index
    %42 = vector.load %arg2[%c8, %c0_26, %c0_27] : memref<9x128x64xbf16, #tpu.memory_space<vmem>>, vector<1x128x64xbf16>
    %43 = vector.shape_cast %42 : vector<1x128x64xbf16> to vector<128x64xbf16>
    %cst_28 = arith.constant dense<0.000000e+00> : vector<128x128xf32>
    %44 = tpu.matmul %43, %41, %cst_28 {dimension_numbers = #tpu.dot_dimension_numbers<[1], [0], [0], [1], [0, 0, 1, 1], [], []>} : vector<128x64xbf16>, vector<64x128xbf16>, vector<128x128xf32> -> vector<128x128xf32>
    %45 = arith.addf %40, %44 : vector<128x128xf32>
    %46 = vector.extract_strided_slice %45 {offsets = [0, 0], sizes = [32, 128], strides = [1, 1]} : vector<128x128xf32> to vector<32x128xf32>
    %47 = vector.extract_strided_slice %45 {offsets = [32, 0], sizes = [32, 128], strides = [1, 1]} : vector<128x128xf32> to vector<32x128xf32>
    %48 = arith.maximumf %46, %47 : vector<32x128xf32>
    %49 = vector.extract_strided_slice %45 {offsets = [64, 0], sizes = [32, 128], strides = [1, 1]} : vector<128x128xf32> to vector<32x128xf32>
    %50 = vector.extract_strided_slice %45 {offsets = [96, 0], sizes = [32, 128], strides = [1, 1]} : vector<128x128xf32> to vector<32x128xf32>
    %51 = arith.maximumf %49, %50 : vector<32x128xf32>
    %52 = arith.maximumf %48, %51 : vector<32x128xf32>
    %c0_29 = arith.constant 0 : index
    %c0_30 = arith.constant 0 : index
    %53 = vector.load %arg3[%c0_29, %c0_30] : memref<32x1xf32, #tpu.memory_space<vmem>>, vector<32x1xf32>
    %54 = vector.broadcast %53 : vector<32x1xf32> to vector<32x128xf32>
    %55 = arith.addf %52, %54 : vector<32x128xf32>
    %cst_31 = arith.constant 0.000000e+00 : f32
    %56 = vector.broadcast %cst_31 : f32 to vector<32x128xf32>
    %57 = arith.maximumf %55, %56 : vector<32x128xf32>
    %58 = arith.truncf %57 : vector<32x128xf32> to vector<32x128xbf16>
    %c0_32 = arith.constant 0 : index
    %c0_33 = arith.constant 0 : index
    %59 = vector.load %arg4[%c0_32, %c0_33] : memref<32x128xbf16, #tpu.memory_space<vmem>>, vector<32x128xbf16>
    tpu.vector_store %arg4[%c0_32, %c0_33], %58 {strides = array<i32>} : memref<32x128xbf16, #tpu.memory_space<vmem>>, vector<32x128xbf16>,
    return
  }
  func.func @transform_0(%arg0: i32) -> (i32, i32) {
    %c0_i32 = arith.constant 0 : i32
    %c0_i32_0 = arith.constant 0 : i32
    return %c0_i32, %arg0 : i32, i32
  }
  func.func @transform_1(%arg0: i32) -> (i32, i32, i32) {
    %c0_i32 = arith.constant 0 : i32
    %c0_i32_0 = arith.constant 0 : i32
    %c0_i32_1 = arith.constant 0 : i32
    %c0_i32_2 = arith.constant 0 : i32
    return %c0_i32, %c0_i32_0, %c0_i32_1 : i32, i32, i32
  }
  func.func @transform_2(%arg0: i32) -> (i32, i32) {
    %c0_i32 = arith.constant 0 : i32
    %c0_i32_0 = arith.constant 0 : i32
    %c0_i32_1 = arith.constant 0 : i32
    return %c0_i32, %c0_i32_0 : i32, i32
  }
  func.func @transform_3(%arg0: i32) -> (i32, i32) {
    %c0_i32 = arith.constant 0 : i32
    %c0_i32_0 = arith.constant 0 : i32
    return %c0_i32, %arg0 : i32, i32
  }
}

module attributes {stable_mosaic.version = 11 : i64} {
  func.func @_linear_kernel(%arg0: i32, %arg1: memref<16x1568xbf16, #tpu.memory_space<vmem>>, %arg2: memref<1568x128xbf16, #tpu.memory_space<vmem>>, %arg3: memref<1x128xf32, #tpu.memory_space<vmem>>, %arg4: memref<16x128xf32, #tpu.memory_space<vmem>>) attributes {dimension_semantics = [#tpu.dimension_semantics<parallel>], iteration_bounds = array<i64: 1>, scalar_prefetch = 0 : i64, scratch_operands = 0 : i64, tpu.core_type = #tpu.core_type<tc>, window_params = [{transform_indices = @transform_0, window_bounds = array<i64: 16, 1568>}, {pipeline_mode = #tpu.pipeline_mode<synchronous>, transform_indices = @transform_1, window_bounds = array<i64: 1568, 128>}, {pipeline_mode = #tpu.pipeline_mode<synchronous>, transform_indices = @transform_2, window_bounds = array<i64: 1, 128>}, {transform_indices = @transform_3, window_bounds = array<i64: 16, 128>}]} {
    %c0 = arith.constant 0 : index
    %c0_0 = arith.constant 0 : index
    %0 = vector.load %arg1[%c0, %c0_0] : memref<16x1568xbf16, #tpu.memory_space<vmem>>, vector<16x1568xbf16>
    %c0_1 = arith.constant 0 : index
    %c0_2 = arith.constant 0 : index
    %1 = vector.load %arg2[%c0_1, %c0_2] : memref<1568x128xbf16, #tpu.memory_space<vmem>>, vector<1568x128xbf16>
    %cst = arith.constant dense<0.000000e+00> : vector<16x128xf32>
    %2 = tpu.matmul %0, %1, %cst {dimension_numbers = #tpu.dot_dimension_numbers<[1], [0], [0], [1], [0, 0, 1, 1], [], []>} : vector<16x1568xbf16>, vector<1568x128xbf16>, vector<16x128xf32> -> vector<16x128xf32>
    %c0_3 = arith.constant 0 : index
    %c0_4 = arith.constant 0 : index
    %3 = vector.load %arg3[%c0_3, %c0_4] : memref<1x128xf32, #tpu.memory_space<vmem>>, vector<1x128xf32>
    %4 = vector.broadcast %3 : vector<1x128xf32> to vector<16x128xf32>
    %5 = arith.addf %2, %4 : vector<16x128xf32>
    %c0_5 = arith.constant 0 : index
    %c0_6 = arith.constant 0 : index
    %6 = vector.load %arg4[%c0_5, %c0_6] : memref<16x128xf32, #tpu.memory_space<vmem>>, vector<16x128xf32>
    tpu.vector_store %arg4[%c0_5, %c0_6], %5 {strides = array<i32>} : memref<16x128xf32, #tpu.memory_space<vmem>>, vector<16x128xf32>,
    return
  }
  func.func @transform_0(%arg0: i32) -> (i32, i32) {
    %c0_i32 = arith.constant 0 : i32
    %c0_i32_0 = arith.constant 0 : i32
    return %arg0, %c0_i32 : i32, i32
  }
  func.func @transform_1(%arg0: i32) -> (i32, i32) {
    %c0_i32 = arith.constant 0 : i32
    %c0_i32_0 = arith.constant 0 : i32
    %c0_i32_1 = arith.constant 0 : i32
    return %c0_i32, %c0_i32_0 : i32, i32
  }
  func.func @transform_2(%arg0: i32) -> (i32, i32) {
    %c0_i32 = arith.constant 0 : i32
    %c0_i32_0 = arith.constant 0 : i32
    %c0_i32_1 = arith.constant 0 : i32
    return %c0_i32, %c0_i32_0 : i32, i32
  }
  func.func @transform_3(%arg0: i32) -> (i32, i32) {
    %c0_i32 = arith.constant 0 : i32
    %c0_i32_0 = arith.constant 0 : i32
    return %arg0, %c0_i32 : i32, i32
  }
}

</mosaic_0001>

<bundles_post_ra>
// kernel: cnn_forward.3
= control target key start
LH: loop header
LB: loop body
LE: loop exit
PB: predicated region body
PF: predicated region fallthrough
CT: control target
= control target key end

     0   :  { %s1859_s12 = smov 0   ;;  %s1861_s13 = smov 0   ;;  %s2259_s0 = inlined_call_operand.vmem [shape: bf16[8,512], index: 0, kind: input, shape index: {}]   ;;  %s2260_s1 = inlined_call_operand.vmem [shape: bf16[9,64,8], index: 1, kind: input, shape index: {}]   ;;  %s2261_s2 = inlined_call_operand.vmem [shape: f32[16,1], index: 2, kind: input, shape index: {}]   ;;  %s2262_s3 = inlined_call_operand.vmem [shape: bf16[16,512], index: 3, kind: output, shape index: {}]  }
   0x1   :  { %s1863_s14 = smov 0  }
   0x2 LB: > { %s1872_s15 = sadd.s32 4294967295, %s1828_s14   ;;  %s1874_s16 = sadd.s32 1, %s1828_s14   ;;  %s1828_s14 = sphi %s1863_s14, %s2266_s14   ;;  %s1824_s13 = sphi %s1861_s13, %s2265_s13   ;;  %s1820_s12 = sphi %s1859_s12, %s2264_s12  }
   0x3   : > { %s85_s17 = ssub.s32 %s1828_s14, %s1874_s16  ;;  %s88_s18 = sadd.s32 1, %s1824_s13 }
   0x4   : > { %p86_p0 = scmp.eq.s32.totalorder %s85_s17, 0  ;;  %p98_p1 = scmp.ne.s32.totalorder %s1824_s13, %s1820_s12 }
   0x5   : > { %p99_p2 = scmp.eq.s32.totalorder %s1872_s15, 1  ;;  %p1443_p3 = scmp.ge.s32.totalorder %s1828_s14, 1 }
   0x6   : > { %s1882_s19 = scalar_select %p86_p0, %s1824_s13, %s88_s18  }
   0x7   : > { %p1884_p4 = por %p99_p2, %p98_p1  ;;  %p138_p5 = scmp.lt.s32.totalorder %s1828_s14, 3 }
   0x9   : > { %p139_p6 = pnand %p1443_p3, %p138_p5 }
   0xa   : > { %s1445_s21 = sshll.u32 (!%p139_p6), %s1872_s15, 1  ;;  %s1831_s22 = smov (!%p139_p6), 127  }
   0xb   : > { %142 = sbr.rel (%p139_p6) target bundleno = 590 (0x24e), region = 32  ;;  %p162_p7 = scmp.lt.s32.totalorder (!%p139_p6), %s1445_s21, 3 }
   0xc   : > { %s1832_s27 = smov (!%p139_p6), 126   ;;  %s1833_s28 = smov (!%p139_p6), 112  }
   0xd   : > { %s1834_s29 = smov (!%p139_p6), 111   ;;  %s1835_s30 = smov (!%p139_p6), 110  }
   0xe   : > { %s1836_s4 = smov (!%p139_p6), 96   ;;  %s1837_s5 = smov (!%p139_p6), 95  }
   0xf   : > { %s1838_s6 = smov (!%p139_p6), 94  }
  0x10   : > { %v1830_v0 = vmov 0   ;;  %s2268_s21 = smov (!%p162_p7, %s1445_s21), 3  ;;  %vm219_vm0 = vcmask 1039360   ;;  %vm235_vm1 = vcmask 1043456   ;;  %vm431_vm2 = vcmask 1031168   ;;  %v1736_v20 = vld [vmem:[%s2260_s1 + $0x20] sm:$0xff] }
  0x11   : > { %217 = vrot.lane.b32.xlu1 %v1830_v0, %s1831_s22  ;;  %1804 = vset.pattern.permute.xlu0 %v1830_v0  ;;  %s1446_s23 = sshll.u32 %s2268_s21, 2  ;;  %vm561_vm3 = vcmask 916480   ;;  %v1738_v21 = vld [vmem:[%s2260_s1 + $0x30] sm:$0xff]  ;;  %vm222_vm4 = vcmask 64512   ;;  %vm691_vm5 = vcmask 908288   ;;  %v1737_v37 = vld [vmem:[%s2260_s1 + $0x28] sm:$0xff] }
  0x12   : > { %1805 = vset.pattern.permute.xlu1 %v1830_v0  ;;  %s165_s26 = scalar_lea.vmem %s2259_s0, %s1446_s23  ;;  %v1739_v38 = vld [vmem:[%s2260_s1 + $0x38] sm:$0xff]  ;;  %v1732_v40 = vld [vmem:[%s2260_s1] sm:$0xff]  ;;  %v1733_v42 = vld [vmem:[%s2260_s1 + $0x8] sm:$0xff]  ;;  %vm821_vm6 = vcmask 900096   ;;  %vm951_vm7 = vcmask 785408   ;;  %vm1081_vm8 = vcmask 777216  }
  0x13   : > { %v169_v1 = vld [vmem:[%s165_s26] sm:$0xff]  ;;  %v1741_v43 = vld [vmem:[%s2260_s1 + $0x48] sm:$0xff]  ;;  %v1734_v51 = vld [vmem:[%s2260_s1 + $0x10] sm:$0xff]  ;;  %vm1211_vm9 = vcmask 769024   ;;  %s158_s26 = sand.u32 1, %s1820_s12  }
  0x14   : > { %v171_v2 = vunpack.c.l.b16 %v169_v1  ;;  %v172_v3 = vunpack.c.h.b16 %v169_v1  ;;  %v1740_v41 = vld [vmem:[%s2260_s1 + $0x40] sm:$0xff]  ;;  %v1742_v52 = vld [vmem:[%s2260_s1 + $0x50] sm:$0xff]  ;;  %v1735_v60 = vld [vmem:[%s2260_s1 + $0x18] sm:$0xff] }
  0x15   : > { %v1743_v61 = vld [vmem:[%s2260_s1 + $0x58] sm:$0xff]  ;;  %v1744_v62 = vld [vmem:[%s2260_s1 + $0x60] sm:$0xff]  ;;  %v1749_v1 = vld [vmem:[%s2260_s1 + $0x88] sm:$0xff] }
  0x16   : > { %v173_v4 = vpack.c.b16 %v171_v2, %v171_v2  ;;  %v174_v5 = vpack.c.b16 %v172_v3, %v172_v3  ;;  %v1748_v63 = vld [vmem:[%s2260_s1 + $0x80] sm:$0xff]  ;;  %v1746_v2 = vld [vmem:[%s2260_s1 + $0x70] sm:$0xff] }
  0x17   : > { %v1750_v3 = vld [vmem:[%s2260_s1 + $0x90] sm:$0xff] }
  0x18   : > { %213 = vrot.lane.b32.xlu0 %v173_v4, %s1831_s22  ;;  %427 = vrot.lane.b32.xlu2 %v174_v5, %s1832_s27  ;;  %v333_v16 = vsel %vm235_vm1, %v173_v4, 0  ;;  %v336_v17 = vsel %vm235_vm1, %v174_v5, 0 }
  0x19   : > { %425 = vrot.lane.b32.xlu1 %v173_v4, %s1832_s27 }
  0x20   : > { %215 = vrot.lane.b32.xlu0 %v174_v5, %s1831_s22  ;;  %429 = vrot.lane.b32.xlu2 %v1830_v0, %s1832_s27  ;;  %s1444_s27 = sshll.u32 %s158_s26, 4 }
  0x21   : > { %557 = vrot.lane.b32.xlu1 %v174_v5, %s1833_s28  ;;  %s160_s12 = scalar_lea.vmem [#allocation2], %s1444_s27 }
  0x28   : > { %555 = vrot.lane.b32.xlu0 %v173_v4, %s1833_s28  ;;  %559 = vrot.lane.b32.xlu2 %v1830_v0, %s1833_s28  ;;  %s1768_s28 = sshll.u32 (%p1884_p4), %s1872_s15, 3 }
  0x29   : > { %687 = vrot.lane.b32.xlu1 %v174_v5, %s1834_s29 }
  0x30   : > { %685 = vrot.lane.b32.xlu0 %v173_v4, %s1834_s29  ;;  %689 = vrot.lane.b32.xlu2 %v1830_v0, %s1834_s29 }
  0x31   : > { %817 = vrot.lane.b32.xlu1 %v174_v5, %s1835_s30 }
  0x38   : > { %815 = vrot.lane.b32.xlu0 %v173_v4, %s1835_s30  ;;  %819 = vrot.lane.b32.xlu2 %v1830_v0, %s1835_s30 }
  0x39   : > { %947 = vrot.lane.b32.xlu1 %v174_v5, %s1836_s4 }
  0x40   : > { %945 = vrot.lane.b32.xlu0 %v173_v4, %s1836_s4  ;;  %949 = vrot.lane.b32.xlu2 %v1830_v0, %s1836_s4  ;;  %s1351_s4 = scalar_lea.vmem (%p1884_p4), %s2262_s3, %s1768_s28 }
  0x41   : > { %1077 = vrot.lane.b32.xlu1 %v174_v5, %s1837_s5 }
  0x48   : > { %1075 = vrot.lane.b32.xlu0 %v173_v4, %s1837_s5  ;;  %1079 = vrot.lane.b32.xlu2 %v1830_v0, %s1837_s5 }
  0x49   : > { %1207 = vrot.lane.b32.xlu1 %v174_v5, %s1838_s6 }
  0x50   : > { %1205 = vrot.lane.b32.xlu0 %v173_v4, %s1838_s6  ;;  %1209 = vrot.lane.b32.xlu2 %v1830_v0, %s1838_s6  ;;  %v1745_v0 = vld [vmem:[%s2260_s1 + $0x68] sm:$0xff] }
  0x72   : > { %v428_v6 = vpop.permute.xlu2 %427 }
  0x7a   : > { %v430_v8 = vpop.permute.xlu2 %429 }
  0x7b   : > { %v433_v23 = vsel %vm431_vm2, %v428_v6, %v430_v8 }
  0x7c   : > { %v450_v26 = vsel %vm235_vm1, %v433_v23, 0 }
  0x82   : > { %v560_v11 = vpop.permute.xlu2 %559 }
  0x83   : > { %v218_v7 = vpop.permute.xlu1 %217 }
  0x8a   : > { %v214_v9 = vpop.permute.xlu0 %213  ;;  %v690_v28 = vpop.permute.xlu2 %689 }
  0x8b   : > { %v426_v10 = vpop.permute.xlu1 %425 }
  0x8c   : > { %v432_v22 = vsel %vm431_vm2, %v426_v10, %v428_v6 }
  0x8d   : > { %v447_v25 = vsel %vm235_vm1, %v432_v22, 0 }
  0x92   : > { %v216_v12 = vpop.permute.xlu0 %215  ;;  %v820_v44 = vpop.permute.xlu2 %819 }
  0x93   : > { %v558_v13 = vpop.permute.xlu1 %557  ;;  %v220_v14 = vsel %vm219_vm0, %v214_v9, %v216_v12  ;;  %v221_v15 = vsel %vm219_vm0, %v216_v12, %v218_v7 }
  0x94   : > { %v237_v18 = vsel %vm235_vm1, %v220_v14, 0  ;;  %v240_v19 = vsel %vm235_vm1, %v221_v15, 0  ;;  %v563_v24 = vsel %vm561_vm3, %v558_v13, %v560_v11 }
  0x95   : > { %249 = vmatpush.bf16.msra.mxu0 %v237_v18  ;;  %1769 = vmatpush.bf16.msra.mxu2 %v237_v18  ;;  %v580_v27 = vsel %vm235_vm1, %v563_v24, 0 }
  0x96   : > { %278 = vmatpush.bf16.msra.mxu1 %v240_v19  ;;  %1770 = vmatpush.bf16.msra.mxu3 %v240_v19 }
  0x98   : > { %1471 = vmatmul.msk.bf16.vlgmr.msra.gmra.mxu0 %vm222_vm4, %v1736_v20  ;;  %1473 = vmatmul.msk.bf16.vlgmr.msra.gmra.mxu2 %vm222_vm4, %v1738_v21 }
  0x99   : > { %345 = vmatpush.bf16.msrb.mxu2 %v333_v16  ;;  %1475 = vmatmul.msk.bf16.vlgmr.msra.gmra.mxu1 %vm222_vm4, %v1736_v20 }
  0x9a   : > { %374 = vmatpush.bf16.msrb.mxu3 %v336_v17  ;;  %459 = vmatpush.bf16.msrb.mxu0 %v447_v25  ;;  %v556_v29 = vpop.permute.xlu0 %555  ;;  %v950_v53 = vpop.permute.xlu2 %949 }
  0x9b   : > { %1477 = vmatmul.msk.bf16.vlgmr.msra.gmra.mxu3 %vm222_vm4, %v1738_v21  ;;  %488 = vmatpush.bf16.msrb.mxu1 %v450_v26  ;;  %v688_v30 = vpop.permute.xlu1 %687  ;;  %v562_v31 = vsel %vm561_vm3, %v556_v29, %v558_v13  ;;  %v1747_v26 = vld [vmem:[%s2260_s1 + $0x78] sm:$0xff] }
  0x9c   : > { %v693_v32 = vsel %vm691_vm5, %v688_v30, %v690_v28  ;;  %v577_v33 = vsel %vm235_vm1, %v562_v31, 0 }
  0x9d   : > { %v710_v34 = vsel %vm235_vm1, %v693_v32, 0  ;;  %589 = vmatpush.bf16.msra.mxu2 %v577_v33 }
  0x9e   : > { %618 = vmatpush.bf16.msra.mxu3 %v580_v27  ;;  %v1751_v27 = vld [vmem:[%s2260_s1 + $0x98] sm:$0xff] }
  0x9f   : > { %748 = vmatpush.bf16.msra.mxu1 %v710_v34 }
  0xa2   : > { %v686_v35 = vpop.permute.xlu0 %685  ;;  %v1080_v4 = vpop.permute.xlu2 %1079 }
  0xa3   : > { %v692_v36 = vsel %vm691_vm5, %v686_v35, %v688_v30  ;;  %v818_v45 = vpop.permute.xlu1 %817 }
  0xa4   : > { %v707_v39 = vsel %vm235_vm1, %v692_v36, 0  ;;  %v823_v46 = vsel %vm821_vm6, %v818_v45, %v820_v44  ;;  %v1752_v36 = vld [vmem:[%s2260_s1 + $0xa0] sm:$0xff] }
  0xa5   : > { %719 = vmatpush.bf16.msra.mxu0 %v707_v39  ;;  %v840_v48 = vsel %vm235_vm1, %v823_v46, 0 }
  0xa8   : > { %1472 = vmatmul.msk.bf16.gmra.mxu0 %vm222_vm4, %v1737_v37  ;;  %1474 = vmatmul.msk.bf16.gmra.mxu2 %vm222_vm4, %v1739_v38 }
  0xa9   : > { %1476 = vmatmul.msk.bf16.gmra.mxu1 %vm222_vm4, %v1737_v37  ;;  %v1756_v37 = vld [vmem:[%s2260_s1 + $0xc0] sm:$0xff] }
  0xaa   : > { %v816_v47 = vpop.permute.xlu0 %815  ;;  %v1210_v16 = vpop.permute.xlu2 %1209 }
  0xab   : > { %1478 = vmatmul.msk.bf16.gmra.mxu3 %vm222_vm4, %v1739_v38  ;;  %v822_v49 = vsel %vm821_vm6, %v816_v47, %v818_v45  ;;  %v948_v54 = vpop.permute.xlu1 %947 }
  0xac   : > { %v837_v50 = vsel %vm235_vm1, %v822_v49, 0  ;;  %v953_v55 = vsel %vm951_vm7, %v948_v54, %v950_v53 }
  0xad   : > { %v970_v57 = vsel %vm235_vm1, %v953_v55, 0 }
  0xb2   : > { %v946_v56 = vpop.permute.xlu0 %945 }
  0xb3   : > { %v952_v58 = vsel %vm951_vm7, %v946_v56, %v948_v54  ;;  %v1078_v5 = vpop.permute.xlu1 %1077 }
  0xb4   : > { %v967_v59 = vsel %vm235_vm1, %v952_v58, 0  ;;  %v1083_v7 = vsel %vm1081_vm8, %v1078_v5, %v1080_v4 }
  0xb5   : > { %v1100_v9 = vsel %vm235_vm1, %v1083_v7, 0 }
  0xb8   : > { %1495 = vmatmul.msk.bf16.vlgmr.msrb.gmra.mxu2 %vm222_vm4, %v1732_v40  ;;  %1527 = vmatmul.msk.bf16.vlgmr.msrb.gmra.mxu0 %vm222_vm4, %v1740_v41 }
  0xb9   : > { %1531 = vmatmul.msk.bf16.vlgmr.msrb.gmra.mxu1 %vm222_vm4, %v1740_v41  ;;  %849 = vmatpush.bf16.msrb.mxu2 %v837_v50 }
  0xba   : > { %1008 = vmatpush.bf16.msrb.mxu1 %v970_v57  ;;  %979 = vmatpush.bf16.msrb.mxu0 %v967_v59  ;;  %v1076_v10 = vpop.permute.xlu0 %1075 }
  0xbb   : > { %1499 = vmatmul.msk.bf16.vlgmr.msrb.gmra.mxu3 %vm222_vm4, %v1732_v40  ;;  %v1082_v11 = vsel %vm1081_vm8, %v1076_v10, %v1078_v5  ;;  %v1208_v18 = vpop.permute.xlu1 %1207  ;;  %v1754_v5 = vld [vmem:[%s2260_s1 + $0xb0] sm:$0xff] }
  0xbc   : > { %878 = vmatpush.bf16.msrb.mxu3 %v840_v48  ;;  %v1097_v12 = vsel %vm235_vm1, %v1082_v11, 0  ;;  %v1213_v19 = vsel %vm1211_vm9, %v1208_v18, %v1210_v16 }
  0xbd   : > { %v1230_v21 = vsel %vm235_vm1, %v1213_v19, 0 }
  0xc2   : > { %v1206_v20 = vpop.permute.xlu0 %1205 }
  0xc3   : > { %v1212_v22 = vsel %vm1211_vm9, %v1206_v20, %v1208_v18 }
  0xc4   : > { %v1227_v23 = vsel %vm235_vm1, %v1212_v22, 0 }
  0xc8   : > { %1496 = vmatmul.msk.bf16.gmra.mxu2 %vm222_vm4, %v1733_v42  ;;  %1528 = vmatmul.msk.bf16.gmra.mxu0 %vm222_vm4, %v1741_v43 }
  0xc9   : > { %1532 = vmatmul.msk.bf16.gmra.mxu1 %vm222_vm4, %v1741_v43 }
  0xcb   : > { %1500 = vmatmul.msk.bf16.gmra.mxu3 %vm222_vm4, %v1733_v42 }
  0xd8   : > { %1497 = vmatmul.msk.bf16.gmra.mxu2 %vm222_vm4, %v1734_v51  ;;  %1529 = vmatmul.msk.bf16.gmra.mxu0 %vm222_vm4, %v1742_v52 }
  0xd9   : > { %1533 = vmatmul.msk.bf16.gmra.mxu1 %vm222_vm4, %v1742_v52  ;;  %v1757_v52 = vld [vmem:[%s2260_s1 + $0xc8] sm:$0xff] }
  0xdb   : > { %1501 = vmatmul.msk.bf16.gmra.mxu3 %vm222_vm4, %v1734_v51  ;;  %v1753_v51 = vld [vmem:[%s2260_s1 + $0xa8] sm:$0xff] }
  0xe8   : > { %1498 = vmatmul.msk.bf16.gmra.mxu2 %vm222_vm4, %v1735_v60  ;;  %1530 = vmatmul.msk.bf16.gmra.mxu0 %vm222_vm4, %v1743_v61 }
  0xe9   : > { %1534 = vmatmul.msk.bf16.gmra.mxu1 %vm222_vm4, %v1743_v61 }
  0xeb   : > { %1502 = vmatmul.msk.bf16.gmra.mxu3 %vm222_vm4, %v1735_v60 }
  0xf8   : > { %1559 = vmatmul.msk.bf16.vlgmr.msra.gmra.mxu2 %vm222_vm4, %v1744_v62  ;;  %1591 = vmatmul.msk.bf16.vlgmr.msra.gmra.mxu0 %vm222_vm4, %v1748_v63 }
  0xf9   : > { %1595 = vmatmul.msk.bf16.vlgmr.msra.gmra.mxu1 %vm222_vm4, %v1748_v63  ;;  %1109 = vmatpush.bf16.msra.mxu2 %v1097_v12 }
  0xfa   : > { %1268 = vmatpush.bf16.msra.mxu1 %v1230_v21  ;;  %1239 = vmatpush.bf16.msra.mxu0 %v1227_v23 }
  0xfb   : > { %1563 = vmatmul.msk.bf16.vlgmr.msra.gmra.mxu3 %vm222_vm4, %v1744_v62 }
  0xfc   : > { %1138 = vmatpush.bf16.msra.mxu3 %v1100_v9 }
 0x108   : > { %1560 = vmatmul.msk.bf16.gmra.mxu2 %vm222_vm4, %v1745_v0  ;;  %1592 = vmatmul.msk.bf16.gmra.mxu0 %vm222_vm4, %v1749_v1 }
 0x109   : > { %1596 = vmatmul.msk.bf16.gmra.mxu1 %vm222_vm4, %v1749_v1 }
 0x10b   : > { %1564 = vmatmul.msk.bf16.gmra.mxu3 %vm222_vm4, %v1745_v0 }
 0x115   : > { %v251_v6 = vpop.f32.mrf.mxu0 }
 0x116   : > { %v280_v8 = vpop.f32.mrf.mxu1 }
 0x118   : > { %1561 = vmatmul.msk.bf16.gmra.mxu2 %vm222_vm4, %v1746_v2  ;;  %1593 = vmatmul.msk.bf16.gmra.mxu0 %vm222_vm4, %v1750_v3 }
 0x119   : > { %1597 = vmatmul.msk.bf16.gmra.mxu1 %vm222_vm4, %v1750_v3 }
 0x11b   : > { %1565 = vmatmul.msk.bf16.gmra.mxu3 %vm222_vm4, %v1746_v2  ;;  %v2000_v13 = vpop.f32.mrf.mxu2 }
 0x11d   : > { %v253_v15 = vpop.f32.mrf.mxu0 }
 0x11e   : > { %v2002_v14 = vpop.f32.mrf.mxu3  ;;  %v282_v17 = vpop.f32.mrf.mxu1 }
 0x123   : > { %v2006_v24 = vpop.f32.mrf.mxu2 }
 0x125   : > { %v256_v28 = vpop.f32.mrf.mxu0 }
 0x126   : > { %v2008_v25 = vpop.f32.mrf.mxu3  ;;  %v285_v29 = vpop.f32.mrf.mxu1 }
 0x128   : > { %1562 = vmatmul.msk.bf16.gmra.mxu2 %vm222_vm4, %v1747_v26  ;;  %1594 = vmatmul.msk.bf16.gmra.mxu0 %vm222_vm4, %v1751_v27 }
 0x129   : > { %1598 = vmatmul.msk.bf16.gmra.mxu1 %vm222_vm4, %v1751_v27  ;;  %v1755_v27 = vld [vmem:[%s2260_s1 + $0xb8] sm:$0xff] }
 0x12b   : > { %1566 = vmatmul.msk.bf16.gmra.mxu3 %vm222_vm4, %v1747_v26  ;;  %v2020_v30 = vpop.f32.mrf.mxu2 }
 0x12d   : > { %v258_v32 = vpop.f32.mrf.mxu0 }
 0x12e   : > { %v2022_v31 = vpop.f32.mrf.mxu3  ;;  %v287_v33 = vpop.f32.mrf.mxu1 }
 0x133   : > { %v2024_v34 = vpop.f32.mrf.mxu2 }
 0x135   : > { %v461_v38 = vpop.f32.mrf.mxu0 }
 0x136   : > { %v2026_v35 = vpop.f32.mrf.mxu3  ;;  %v490_v39 = vpop.f32.mrf.mxu1 }
 0x138   : > { %1623 = vmatmul.msk.bf16.vlgmr.msrb.gmra.mxu2 %vm222_vm4, %v1752_v36  ;;  %1655 = vmatmul.msk.bf16.vlgmr.msrb.gmra.mxu0 %vm222_vm4, %v1756_v37 }
 0x139   : > { %1659 = vmatmul.msk.bf16.vlgmr.msrb.gmra.mxu1 %vm222_vm4, %v1756_v37 }
 0x13b   : > { %1627 = vmatmul.msk.bf16.vlgmr.msrb.gmra.mxu3 %vm222_vm4, %v1752_v36  ;;  %v347_v40 = vpop.f32.mrf.mxu2 }
 0x13c   : > { %v348_v41 = vadd.f32 %v347_v40, %v251_v6  ;;  %v1758_v6 = vld [vmem:[%s2260_s1 + $0xd0] sm:$0xff] }
 0x13d   : > { %v463_v44 = vpop.f32.mrf.mxu0 }
 0x13e   : > { %v376_v42 = vpop.f32.mrf.mxu3  ;;  %v492_v45 = vpop.f32.mrf.mxu1  ;;  %v2038_v46 = vadd.f32 %v461_v38, %v348_v41 }
 0x13f   : > { %v377_v43 = vadd.f32 %v376_v42, %v280_v8 }
 0x141   : > { %v2040_v47 = vadd.f32 %v490_v39, %v377_v43 }
 0x143   : > { %v349_v48 = vpop.f32.mrf.mxu2 }
 0x144   : > { %v350_v49 = vadd.f32 %v349_v48, %v253_v15 }
 0x145   : > { %v466_v54 = vpop.f32.mrf.mxu0 }
 0x146   : > { %v378_v50 = vpop.f32.mrf.mxu3  ;;  %v495_v55 = vpop.f32.mrf.mxu1  ;;  %v2048_v56 = vadd.f32 %v463_v44, %v350_v49 }
 0x147   : > { %v379_v53 = vadd.f32 %v378_v50, %v282_v17 }
 0x148   : > { %1624 = vmatmul.msk.bf16.gmra.mxu2 %vm222_vm4, %v1753_v51  ;;  %1656 = vmatmul.msk.bf16.gmra.mxu0 %vm222_vm4, %v1757_v52 }
 0x149   : > { %v2050_v57 = vadd.f32 %v492_v45, %v379_v53  ;;  %1660 = vmatmul.msk.bf16.gmra.mxu1 %vm222_vm4, %v1757_v52  ;;  %v1760_v45 = vld [vmem:[%s2260_s1 + $0xe0] sm:$0xff] }
 0x14b   : > { %1628 = vmatmul.msk.bf16.gmra.mxu3 %vm222_vm4, %v1753_v51  ;;  %v352_v58 = vpop.f32.mrf.mxu2 }
 0x14c   : > { %v353_v59 = vadd.f32 %v352_v58, %v256_v28 }
 0x14d   : > { %v468_v62 = vpop.f32.mrf.mxu0 }
 0x14e   : > { %v381_v60 = vpop.f32.mrf.mxu3  ;;  %v497_v63 = vpop.f32.mrf.mxu1  ;;  %v2056_v0 = vadd.f32 %v466_v54, %v353_v59 }
 0x14f   : > { %v382_v61 = vadd.f32 %v381_v60, %v285_v29 }
 0x151   : > { %v2058_v1 = vadd.f32 %v495_v55, %v382_v61 }
 0x153   : > { %v354_v2 = vpop.f32.mrf.mxu2 }
 0x154   : > { %v355_v3 = vadd.f32 %v354_v2, %v258_v32 }
 0x155   : > { %v471_v8 = vpop.f32.mrf.mxu0 }
 0x156   : > { %v383_v4 = vpop.f32.mrf.mxu3  ;;  %v500_v9 = vpop.f32.mrf.mxu1  ;;  %v2066_v10 = vadd.f32 %v468_v62, %v355_v3 }
 0x157   : > { %v384_v7 = vadd.f32 %v383_v4, %v287_v33 }
 0x158   : > { %1625 = vmatmul.msk.bf16.gmra.mxu2 %vm222_vm4, %v1754_v5  ;;  %1657 = vmatmul.msk.bf16.gmra.mxu0 %vm222_vm4, %v1758_v6 }
 0x159   : > { %v2068_v11 = vadd.f32 %v497_v63, %v384_v7  ;;  %1661 = vmatmul.msk.bf16.gmra.mxu1 %vm222_vm4, %v1758_v6  ;;  %v1761_v63 = vld [vmem:[%s2260_s1 + $0xe8] sm:$0xff] }
 0x15b   : > { %1629 = vmatmul.msk.bf16.gmra.mxu3 %vm222_vm4, %v1754_v5  ;;  %v357_v12 = vpop.f32.mrf.mxu2 }
 0x15c   : > { %v358_v15 = vadd.f32 %v357_v12, %v2000_v13  ;;  %v1759_v13 = vld [vmem:[%s2260_s1 + $0xd8] sm:$0xff] }
 0x15d   : > { %v473_v18 = vpop.f32.mrf.mxu0 }
 0x15e   : > { %v386_v16 = vpop.f32.mrf.mxu3  ;;  %v502_v19 = vpop.f32.mrf.mxu1  ;;  %v2076_v20 = vadd.f32 %v471_v8, %v358_v15 }
 0x15f   : > { %v387_v17 = vadd.f32 %v386_v16, %v2002_v14 }
 0x161   : > { %v2078_v21 = vadd.f32 %v500_v9, %v387_v17 }
 0x163   : > { %v359_v22 = vpop.f32.mrf.mxu2 }
 0x164   : > { %v360_v23 = vadd.f32 %v359_v22, %v2006_v24 }
 0x165   : > { %v476_v28 = vpop.f32.mrf.mxu0 }
 0x166   : > { %v388_v26 = vpop.f32.mrf.mxu3  ;;  %v505_v29 = vpop.f32.mrf.mxu1  ;;  %v2088_v32 = vadd.f32 %v473_v18, %v360_v23 }
 0x167   : > { %v389_v14 = vadd.f32 %v388_v26, %v2008_v25 }
 0x168   : > { %1626 = vmatmul.msk.bf16.gmra.mxu2 %vm222_vm4, %v1755_v27  ;;  %1658 = vmatmul.msk.bf16.gmra.mxu0 %vm222_vm4, %v1759_v13 }
 0x169   : > { %v2090_v33 = vadd.f32 %v502_v19, %v389_v14  ;;  %1662 = vmatmul.msk.bf16.gmra.mxu1 %vm222_vm4, %v1759_v13  ;;  %v1762_v19 = vld [vmem:[%s2260_s1 + $0xf0] sm:$0xff] }
 0x16b   : > { %1630 = vmatmul.msk.bf16.gmra.mxu3 %vm222_vm4, %v1755_v27  ;;  %v362_v24 = vpop.f32.mrf.mxu2 }
 0x16c   : > { %v363_v36 = vadd.f32 %v362_v24, %v2020_v30  ;;  %v1764_v30 = vld [vmem:[%s2260_s1 + $0x100] sm:$0xff] }
 0x16d   : > { %v478_v38 = vpop.f32.mrf.mxu0  ;;  %v1318_v24 = vld [vmem:[%s2261_s2] sm:$0xff] }
 0x16e   : > { %v391_v37 = vpop.f32.mrf.mxu3  ;;  %v507_v39 = vpop.f32.mrf.mxu1  ;;  %v2098_v40 = vadd.f32 %v476_v28, %v363_v36  ;;  %1322 = vperm.xlu0 %1804, %v1318_v24  }
 0x16f   : > { %v392_v25 = vadd.f32 %v391_v37, %v2022_v31 }
 0x171   : > { %v2100_v41 = vadd.f32 %v505_v29, %v392_v25 }
 0x173   : > { %v364_v42 = vpop.f32.mrf.mxu2 }
 0x174   : > { %v365_v43 = vadd.f32 %v364_v42, %v2024_v34 }
 0x175   : > { %v721_v48 = vpop.f32.mrf.mxu0 }
 0x176   : > { %v393_v44 = vpop.f32.mrf.mxu3  ;;  %v750_v49 = vpop.f32.mrf.mxu1  ;;  %v2110_v50 = vadd.f32 %v478_v38, %v365_v43 }
 0x177   : > { %v394_v31 = vadd.f32 %v393_v44, %v2026_v35 }
 0x178   : > { %1687 = vmatmul.msk.bf16.vlgmr.msra.gmra.mxu2 %vm222_vm4, %v1760_v45  ;;  %1719 = vmatmul.msk.bf16.vlgmr.msra.gmra.mxu0 %vm222_vm4, %v1764_v30 }
 0x179   : > { %v2112_v51 = vadd.f32 %v507_v39, %v394_v31  ;;  %1723 = vmatmul.msk.bf16.vlgmr.msra.gmra.mxu1 %vm222_vm4, %v1764_v30 }
 0x17b   : > { %1691 = vmatmul.msk.bf16.vlgmr.msra.gmra.mxu3 %vm222_vm4, %v1760_v45  ;;  %v591_v34 = vpop.f32.mrf.mxu2  ;;  %v1319_v45 = vld [vmem:[%s2261_s2 + $0x8] sm:$0xff] }
 0x17c   : > { %v640_v52 = vadd.f32 %v591_v34, %v2038_v46  ;;  %v1765_v46 = vld [vmem:[%s2260_s1 + $0x108] sm:$0xff]  ;;  %1327 = vperm.xlu1 %1805, %v1319_v45  }
 0x17d   : > { %v723_v54 = vpop.f32.mrf.mxu0 }
 0x17e   : > { %v620_v53 = vpop.f32.mrf.mxu3  ;;  %v752_v55 = vpop.f32.mrf.mxu1  ;;  %v2120_v58 = vadd.f32 %v721_v48, %v640_v52 }
 0x17f   : > { %v641_v35 = vadd.f32 %v620_v53, %v2040_v47 }
 0x181   : > { %v2122_v59 = vadd.f32 %v750_v49, %v641_v35 }
 0x183   : > { %v593_v60 = vpop.f32.mrf.mxu2 }
 0x184   : > { %v642_v61 = vadd.f32 %v593_v60, %v2048_v56 }
 0x185   : > { %v726_v2 = vpop.f32.mrf.mxu0 }
 0x186   : > { %v622_v62 = vpop.f32.mrf.mxu3  ;;  %v755_v3 = vpop.f32.mrf.mxu1  ;;  %v2132_v4 = vadd.f32 %v723_v54, %v642_v61 }
 0x187   : > { %v643_v47 = vadd.f32 %v622_v62, %v2050_v57 }
 0x188   : > { %1688 = vmatmul.msk.bf16.gmra.mxu2 %vm222_vm4, %v1761_v63  ;;  %1720 = vmatmul.msk.bf16.gmra.mxu0 %vm222_vm4, %v1765_v46 }
 0x189   : > { %v2134_v5 = vadd.f32 %v752_v55, %v643_v47  ;;  %1724 = vmatmul.msk.bf16.gmra.mxu1 %vm222_vm4, %v1765_v46 }
 0x18b   : > { %1692 = vmatmul.msk.bf16.gmra.mxu3 %vm222_vm4, %v1761_v63  ;;  %v596_v56 = vpop.f32.mrf.mxu2 }
 0x18c   : > { %v644_v6 = vadd.f32 %v596_v56, %v2056_v0  ;;  %v1766_v0 = vld [vmem:[%s2260_s1 + $0x110] sm:$0xff] }
 0x18d   : > { %v728_v8 = vpop.f32.mrf.mxu0 }
 0x18e   : > { %v625_v7 = vpop.f32.mrf.mxu3  ;;  %v757_v9 = vpop.f32.mrf.mxu1  ;;  %v2142_v12 = vadd.f32 %v726_v2, %v644_v6 }
 0x18f   : > { %v645_v57 = vadd.f32 %v625_v7, %v2058_v1 }
 0x191   : > { %v2144_v15 = vadd.f32 %v755_v3, %v645_v57 }
 0x193   : > { %v598_v16 = vpop.f32.mrf.mxu2 }
 0x194   : > { %v646_v17 = vadd.f32 %v598_v16, %v2066_v10 }
 0x195   : > { %v731_v22 = vpop.f32.mrf.mxu0 }
 0x196   : > { %v627_v18 = vpop.f32.mrf.mxu3  ;;  %v760_v23 = vpop.f32.mrf.mxu1  ;;  %v2154_v26 = vadd.f32 %v728_v8, %v646_v17 }
 0x197   : > { %v647_v1 = vadd.f32 %v627_v18, %v2068_v11 }
 0x198   : > { %1689 = vmatmul.msk.bf16.gmra.mxu2 %vm222_vm4, %v1762_v19  ;;  %1721 = vmatmul.msk.bf16.gmra.mxu0 %vm222_vm4, %v1766_v0 }
 0x199   : > { %v2156_v27 = vadd.f32 %v757_v9, %v647_v1  ;;  %1725 = vmatmul.msk.bf16.gmra.mxu1 %vm222_vm4, %v1766_v0 }
 0x19b   : > { %1693 = vmatmul.msk.bf16.gmra.mxu3 %vm222_vm4, %v1762_v19  ;;  %v601_v10 = vpop.f32.mrf.mxu2 }
 0x19c   : > { %v648_v13 = vadd.f32 %v601_v10, %v2076_v20  ;;  %v1763_v20 = vld [vmem:[%s2260_s1 + $0xf8] sm:$0xff] }
 0x19d   : > { %v733_v28 = vpop.f32.mrf.mxu0 }
 0x19e   : > { %v630_v14 = vpop.f32.mrf.mxu3  ;;  %v762_v29 = vpop.f32.mrf.mxu1  ;;  %v2167_v36 = vadd.f32 %v731_v22, %v648_v13 }
 0x19f   : > { %v649_v11 = vadd.f32 %v630_v14, %v2078_v21  ;;  %v1767_v21 = vld [vmem:[%s2260_s1 + $0x118] sm:$0xff] }
 0x1a1   : > { %v2169_v37 = vadd.f32 %v760_v23, %v649_v11 }
 0x1a3   : > { %v603_v25 = vpop.f32.mrf.mxu2 }
 0x1a4   : > { %v650_v38 = vadd.f32 %v603_v25, %v2088_v32 }
 0x1a5   : > { %v736_v43 = vpop.f32.mrf.mxu0 }
 0x1a6   : > { %v632_v39 = vpop.f32.mrf.mxu3  ;;  %v765_v44 = vpop.f32.mrf.mxu1  ;;  %v2182_v30 = vadd.f32 %v733_v28, %v650_v38 }
 0x1a7   : > { %v651_v42 = vadd.f32 %v632_v39, %v2090_v33 }
 0x1a8   : > { %1690 = vmatmul.msk.bf16.gmra.mxu2 %vm222_vm4, %v1763_v20  ;;  %1722 = vmatmul.msk.bf16.gmra.mxu0 %vm222_vm4, %v1767_v21 }
 0x1a9   : > { %v2184_v32 = vadd.f32 %v762_v29, %v651_v42  ;;  %1726 = vmatmul.msk.bf16.gmra.mxu1 %vm222_vm4, %v1767_v21 }
 0x1ab   : > { %1694 = vmatmul.msk.bf16.gmra.mxu3 %vm222_vm4, %v1763_v20  ;;  %v606_v33 = vpop.f32.mrf.mxu2 }
 0x1ac   : > { %v652_v31 = vadd.f32 %v606_v33, %v2098_v40 }
 0x1ad   : > { %v738_v34 = vpop.f32.mrf.mxu0 }
 0x1ae   : > { %v635_v48 = vpop.f32.mrf.mxu3  ;;  %v767_v52 = vpop.f32.mrf.mxu1  ;;  %v2192_v53 = vadd.f32 %v736_v43, %v652_v31 }
 0x1af   : > { %v653_v49 = vadd.f32 %v635_v48, %v2100_v41 }
 0x1b1   : > { %v2194_v35 = vadd.f32 %v765_v44, %v653_v49 }
 0x1b3   : > { %v608_v54 = vpop.f32.mrf.mxu2 }
 0x1b4   : > { %v654_v55 = vadd.f32 %v608_v54, %v2110_v50 }
 0x1b5   : > { %v981_v62 = vpop.f32.mrf.mxu0 }
 0x1b6   : > { %v637_v60 = vpop.f32.mrf.mxu3  ;;  %v1010_v63 = vpop.f32.mrf.mxu1  ;;  %v2198_v46 = vadd.f32 %v738_v34, %v654_v55 }
 0x1b7   : > { %v655_v61 = vadd.f32 %v637_v60, %v2112_v51 }
 0x1b9   : > { %v2200_v40 = vadd.f32 %v767_v52, %v655_v61 }
 0x1bb   : > { %v851_v47 = vpop.f32.mrf.mxu2 }
 0x1bc   : > { %v900_v41 = vadd.f32 %v851_v47, %v2120_v58 }
 0x1bd   : > { %v983_v56 = vpop.f32.mrf.mxu0 }
 0x1be   : > { %v880_v2 = vpop.f32.mrf.mxu3  ;;  %v1012_v6 = vpop.f32.mrf.mxu1  ;;  %v1030_v7 = vadd.f32 %v981_v62, %v900_v41 }
 0x1bf   : > { %v901_v3 = vadd.f32 %v880_v2, %v2122_v59 }
 0x1c1   : > { %v1031_v57 = vadd.f32 %v1010_v63, %v901_v3 }
 0x1c3   : > { %v853_v50 = vpop.f32.mrf.mxu2 }
 0x1c4   : > { %v902_v8 = vadd.f32 %v853_v50, %v2132_v4 }
 0x1c5   : > { %v986_v16 = vpop.f32.mrf.mxu0 }
 0x1c6   : > { %v882_v51 = vpop.f32.mrf.mxu3  ;;  %v1015_v17 = vpop.f32.mrf.mxu1  ;;  %v2206_v18 = vadd.f32 %v983_v56, %v902_v8 }
 0x1c7   : > { %v903_v9 = vadd.f32 %v882_v51, %v2134_v5 }
 0x1c9   : > { %v2208_v19 = vadd.f32 %v1012_v6, %v903_v9 }
 0x1cb   : > { %v856_v58 = vpop.f32.mrf.mxu2 }
 0x1cc   : > { %v904_v0 = vadd.f32 %v856_v58, %v2142_v12 }
 0x1cd   : > { %v988_v22 = vpop.f32.mrf.mxu0 }
 0x1ce   : > { %v885_v59 = vpop.f32.mrf.mxu3  ;;  %v1017_v23 = vpop.f32.mrf.mxu1  ;;  %v1034_v10 = vadd.f32 %v986_v16, %v904_v0 }
 0x1cf   : > { %v905_v1 = vadd.f32 %v885_v59, %v2144_v15 }
 0x1d1   : > { %v1035_v13 = vadd.f32 %v1015_v17, %v905_v1 }
 0x1d3   : > { %v858_v4 = vpop.f32.mrf.mxu2 }
 0x1d4   : > { %v906_v14 = vadd.f32 %v858_v4, %v2154_v26 }
 0x1d5   : > { %v991_v28 = vpop.f32.mrf.mxu0 }
 0x1d6   : > { %v887_v5 = vpop.f32.mrf.mxu3  ;;  %v1020_v29 = vpop.f32.mrf.mxu1  ;;  %v1036_v24 = vadd.f32 %v988_v22, %v906_v14 }
 0x1d7   : > { %v907_v11 = vadd.f32 %v887_v5, %v2156_v27 }
 0x1d9   : > { %v1037_v25 = vadd.f32 %v1017_v23, %v907_v11 }
 0x1db   : > { %v861_v38 = vpop.f32.mrf.mxu2 }
 0x1dc   : > { %v908_v12 = vadd.f32 %v861_v38, %v2167_v36 }
 0x1dd   : > { %v993_v20 = vpop.f32.mrf.mxu0 }
 0x1de   : > { %v890_v39 = vpop.f32.mrf.mxu3  ;;  %v1022_v21 = vpop.f32.mrf.mxu1  ;;  %v1038_v42 = vadd.f32 %v991_v28, %v908_v12 }
 0x1df   : > { %v909_v15 = vadd.f32 %v890_v39, %v2169_v37 }
 0x1e1   : > { %v2216_v43 = vadd.f32 %v1020_v29, %v909_v15 }
 0x1e3   : > { %v863_v44 = vpop.f32.mrf.mxu2 }
 0x1e4   : > { %v910_v26 = vadd.f32 %v863_v44, %v2182_v30 }
 0x1e5   : > { %v996_v33 = vpop.f32.mrf.mxu0 }
 0x1e6   : > { %v892_v45 = vpop.f32.mrf.mxu3  ;;  %v1025_v31 = vpop.f32.mrf.mxu1  ;;  %v2220_v48 = vadd.f32 %v993_v20, %v910_v26 }
 0x1e7   : > { %v911_v27 = vadd.f32 %v892_v45, %v2184_v32 }
 0x1e9   : > { %v2222_v49 = vadd.f32 %v1022_v21, %v911_v27 }
 0x1eb   : > { %v866_v36 = vpop.f32.mrf.mxu2 }
 0x1ed   : > { %v2224_v37 = vpop.f32.mrf.mxu0 }
 0x1ee   : > { %v895_v34 = vpop.f32.mrf.mxu3  ;;  %v2226_v52 = vpop.f32.mrf.mxu1 }
 0x1f3   : > { %v868_v54 = vpop.f32.mrf.mxu2 }
 0x1f5   : > { %v1241_v60 = vpop.f32.mrf.mxu0 }
 0x1f6   : > { %v897_v55 = vpop.f32.mrf.mxu3  ;;  %v1270_v61 = vpop.f32.mrf.mxu1 }
 0x1fb   : > { %v1111_v30 = vpop.f32.mrf.mxu2 }
 0x1fc   : > { %v1160_v56 = vadd.f32 %v1111_v30, %v1030_v7 }
 0x1fd   : > { %v1243_v63 = vpop.f32.mrf.mxu0 }
 0x1fe   : > { %v1140_v62 = vpop.f32.mrf.mxu3  ;;  %v1272_v32 = vpop.f32.mrf.mxu1  ;;  %v1290_v17 = vadd.f32 %v1241_v60, %v1160_v56 }
 0x1ff   : > { %v1161_v6 = vadd.f32 %v1140_v62, %v1031_v57 }
 0x201   : > { %v1291_v59 = vadd.f32 %v1270_v61, %v1161_v6 }
 0x203   : > { %v1113_v47 = vpop.f32.mrf.mxu2 }
 0x204   : > { %v1162_v4 = vadd.f32 %v1113_v47, %v2206_v18 }
 0x205   : > { %v1246_v2 = vpop.f32.mrf.mxu0 }
 0x206   : > { %v1142_v41 = vpop.f32.mrf.mxu3  ;;  %v1275_v3 = vpop.f32.mrf.mxu1  ;;  %v1292_v28 = vadd.f32 %v1243_v63, %v1162_v4 }
 0x207   : > { %v1163_v14 = vadd.f32 %v1142_v41, %v2208_v19 }
 0x209   : > { %v2230_v29 = vadd.f32 %v1272_v32, %v1163_v14  ;;  %v1328_v14 = vpop.permute.xlu1 %1327 }
 0x20b   : > { %v1116_v50 = vpop.f32.mrf.mxu2 }
 0x20c   : > { %v1164_v8 = vadd.f32 %v1116_v50, %v1034_v10 }
 0x20d   : > { %v1248_v16 = vpop.f32.mrf.mxu0 }
 0x20e   : > { %v1145_v51 = vpop.f32.mrf.mxu3  ;;  %v1294_v58 = vadd.f32 %v1246_v2, %v1164_v8  ;;  %v1277_v0 = vpop.f32.mrf.mxu1  ;;  %v914_v2 = vadd.f32 %v868_v54, %v2198_v46 }
 0x20f   : > { %v1165_v9 = vadd.f32 %v1145_v51, %v1035_v13 }
 0x210   : > { %v1306_v22 = vmax.f32 %v1290_v17, %v1294_v58 }
 0x211   : > { %v1295_v1 = vadd.f32 %v1275_v3, %v1165_v9 }
 0x213   : > { %v1307_v23 = vmax.f32 %v1291_v59, %v1295_v1  ;;  %v1118_v5 = vpop.f32.mrf.mxu2 }
 0x214   : > { %v1166_v11 = vadd.f32 %v1118_v5, %v1036_v24  ;;  %v912_v24 = vadd.f32 %v866_v36, %v2192_v53  ;;  %v915_v53 = vadd.f32 %v897_v55, %v2200_v40 }
 0x215   : > { %v1251_v38 = vpop.f32.mrf.mxu0 }
 0x216   : > { %v1147_v7 = vpop.f32.mrf.mxu3  ;;  %v1296_v10 = vadd.f32 %v1248_v16, %v1166_v11  ;;  %v1280_v12 = vpop.f32.mrf.mxu1  ;;  %v1042_v27 = vadd.f32 %v996_v33, %v912_v24  ;;  %v1045_v8 = vadd.f32 %v2226_v52, %v915_v53 }
 0x217   : > { %v1167_v57 = vadd.f32 %v1147_v7, %v1037_v25  ;;  %v913_v25 = vadd.f32 %v895_v34, %v2194_v35  ;;  %v1323_v34 = vpop.permute.xlu0 %1322 }
 0x218   : > { %v1308_v39 = vmax.f32 %v1292_v28, %v1296_v10 }
 0x219   : > { %v1297_v13 = vadd.f32 %v1277_v0, %v1167_v57  ;;  %v1043_v62 = vadd.f32 %v1025_v31, %v913_v25  ;;  %v1044_v31 = vadd.f32 %v2224_v37, %v914_v2 }
 0x21b   : > { %v1309_v15 = vmax.f32 %v2230_v29, %v1297_v13  ;;  %v1121_v20 = vpop.f32.mrf.mxu2 }
 0x21c   : > { %v1168_v45 = vadd.f32 %v1121_v20, %v1038_v42 }
 0x21d   : > { %v1253_v44 = vpop.f32.mrf.mxu0 }
 0x21e   : > { %v1150_v21 = vpop.f32.mrf.mxu3  ;;  %v1282_v18 = vpop.f32.mrf.mxu1  ;;  %v1298_v3 = vadd.f32 %v1251_v38, %v1168_v45 }
 0x21f   : > { %v1169_v60 = vadd.f32 %v1150_v21, %v2216_v43 }
 0x221   : > { %v1299_v36 = vadd.f32 %v1280_v12, %v1169_v60 }
 0x223   : > { %v1123_v26 = vpop.f32.mrf.mxu2 }
 0x224   : > { %v1170_v43 = vadd.f32 %v1123_v26, %v2220_v48 }
 0x225   : > { %v1256_v61 = vpop.f32.mrf.mxu0 }
 0x226   : > { %v1152_v19 = vpop.f32.mrf.mxu3  ;;  %v1285_v63 = vpop.f32.mrf.mxu1  ;;  %v1300_v58 = vadd.f32 %v1253_v44, %v1170_v43 }
 0x227   : > { %v1171_v50 = vadd.f32 %v1152_v19, %v2222_v49 }
 0x229   : > { %v1301_v1 = vadd.f32 %v1282_v18, %v1171_v50 }
 0x22b   : > { %v1126_v30 = vpop.f32.mrf.mxu2 }
 0x22c   : > { %v1172_v32 = vadd.f32 %v1126_v30, %v1042_v27 }
 0x22d   : > { %v1258_v55 = vpop.f32.mrf.mxu0 }
 0x22e   : > { %v1155_v47 = vpop.f32.mrf.mxu3  ;;  %v1302_v56 = vadd.f32 %v1256_v61, %v1172_v32  ;;  %v1287_v0 = vpop.f32.mrf.mxu1 }
 0x22f   : > { %v1173_v41 = vadd.f32 %v1155_v47, %v1043_v62 }
 0x230   : > { %v1310_v42 = vmax.f32 %v1298_v3, %v1302_v56 }
 0x231   : > { %v1303_v35 = vadd.f32 %v1285_v63, %v1173_v41 }
 0x232   : > { %v1314_v6 = vmax.f32 %v1306_v22, %v1310_v42 }
 0x233   : > { %v1311_v33 = vmax.f32 %v1299_v36, %v1303_v35  ;;  %v1128_v54 = vpop.f32.mrf.mxu2 }
 0x234   : > { %v1330_v9 = vadd.f32 %v1323_v34, %v1314_v6  ;;  %v1174_v40 = vadd.f32 %v1128_v54, %v1044_v31 }
 0x235   : > { %v1315_v46 = vmax.f32 %v1307_v23, %v1311_v33 }
 0x236   : > { %v1157_v51 = vpop.f32.mrf.mxu3  ;;  %v1334_v48 = vmax.f32 %v1330_v9, 0.0  ;;  %v1304_v59 = vadd.f32 %v1258_v55, %v1174_v40 }
 0x237   : > { %v1175_v16 = vadd.f32 %v1157_v51, %v1045_v8  ;;  %v1331_v17 = vadd.f32 %v1323_v34, %v1315_v46 }
 0x238   : > { %v1312_v4 = vmax.f32 %v1300_v58, %v1304_v59 }
 0x239   : > { %v1305_v22 = vadd.f32 %v1287_v0, %v1175_v16  ;;  %v1335_v37 = vmax.f32 %v1331_v17, 0.0 }
 0x23a   : > { %v1316_v23 = vmax.f32 %v1308_v39, %v1312_v4 }
 0x23b   : > { %v1338_v49 = vpack.c.bf16 %v1335_v37, %v1334_v48  ;;  %v1313_v52 = vmax.f32 %v1301_v1, %v1305_v22 }
 0x23c   : > { %v1332_v11 = vadd.f32 %v1328_v14, %v1316_v23 }
 0x23d   : > { %1340 = vst [vmem:[%s160_s12] sm:$0xff] %v1338_v49  ;;  %v1317_v5 = vmax.f32 %v1309_v15, %v1313_v52 }
 0x23e   : > { %v1336_v57 = vmax.f32 %v1332_v11, 0.0 }
 0x23f   : > { %v1333_v7 = vadd.f32 %v1328_v14, %v1317_v5 }
 0x241   : > { %v1337_v28 = vmax.f32 %v1333_v7, 0.0  ;;  %1348 = sbr.rel (!%p1884_p4) target bundleno = 590 (0x24e), region = 36 }
 0x243   : > { %v1339_v10 = vpack.c.bf16 %v1337_v28, %v1336_v57 }
 0x244   : > { %v1382_v29 = vld [vmem:[%s160_s12] sm:$0xff] (%p1884_p4) }
 0x245   : > { %1341 = vst [vmem:[%s160_s12 + $0x8] sm:$0xff] %v1339_v10 }
 0x246   : > { %1383 = vst [vmem:[%s1351_s4] sm:$0xff] %v1382_v29 }
 0x24c   : > { %v1384_v13 = vld [vmem:[%s160_s12 + $0x8] sm:$0xff] }
 0x24d   : > { %1385 = vst [vmem:[%s1351_s4 + $0x10] sm:$0xff] %v1384_v13 }
 0x24e PF: > { %p10_p8 = scmp.ge.s32.totalorder %s1874_s16, 4   ;;  %s2264_s12 = smov %s1824_s13 }
 0x24f   : > { %s2265_s13 = smov %s1882_s19  ;;  %s2266_s14 = smov %s1874_s16 }
 0x250   :  { %12 = sbr.rel (!%p10_p8) target bundleno = 2 (0x2), region = 108 }

// kernel: cnn_forward.4
= control target key start
LH: loop header
LB: loop body
LE: loop exit
PB: predicated region body
PF: predicated region fallthrough
CT: control target
= control target key end

     0   :  { %s2579_s12 = smov 0   ;;  %s2581_s13 = smov 0   ;;  %s3151_s0 = inlined_call_operand.vmem [shape: bf16[64,256], index: 0, kind: input, shape index: {}]   ;;  %s3152_s1 = inlined_call_operand.vmem [shape: bf16[9,128,64], index: 1, kind: input, shape index: {}]   ;;  %s3153_s2 = inlined_call_operand.vmem [shape: f32[32,1], index: 2, kind: input, shape index: {}]   ;;  %s3154_s3 = inlined_call_operand.vmem [shape: bf16[32,256], index: 3, kind: output, shape index: {}]  }
   0x1   :  { %s2583_s14 = smov 0  }
   0x2 LB: > { %s1874_s15 = sadd.s32 4294967295, %s2548_s14   ;;  %s2596_s16 = sadd.s32 1, %s2548_s14   ;;  %s2548_s14 = sphi %s2583_s14, %s3158_s14   ;;  %s2544_s13 = sphi %s2581_s13, %s3157_s13   ;;  %s2540_s12 = sphi %s2579_s12, %s3156_s12  }
   0x3   : > { %s17_s17 = ssub.s32 %s2548_s14, %s2596_s16  ;;  %s20_s18 = sadd.s32 1, %s2544_s13 }
   0x4   : > { %p18_p0 = scmp.eq.s32.totalorder %s17_s17, 0  ;;  %p27_p1 = scmp.ne.s32.totalorder %s2544_s13, %s2540_s12 }
   0x5   : > { %p28_p2 = scmp.eq.s32.totalorder %s2548_s14, 0  ;;  %p99_p3 = scmp.eq.s32.totalorder %s1874_s15, 1 }
   0x6   : > { %s2607_s19 = scalar_select %p18_p0, %s2544_s13, %s20_s18  }
   0x7   : > { %p29_p4 = por %p28_p2, %p27_p1  ;;  %p2609_p5 = por %p99_p3, %p27_p1 }
   0x8   : > { %p1877_p6 = scmp.ge.s32.totalorder %s2548_s14, 2 }
   0xa   : > { %127 = sbr.rel (%p1877_p6) target bundleno = 27 (0x1b), region = 24 }
   0xf   : > { %130 = sbr.rel (!%p29_p4) target bundleno = 27 (0x1b), region = 28  ;;  %s132_s21 = sand.u32 (%p29_p4), 1, %s2544_s13  }
  0x10   : > { %s1879_s22 = sshll.u32 (%p29_p4), %s2548_s14, 2  ;;  %s1878_s23 = sshll.u32 (%p29_p4), %s132_s21, 5 }
  0x11   : > { %s136_s26 = scalar_lea.vmem (%p29_p4), %s3151_s0, %s1879_s22  ;;  %s134_s27 = scalar_lea.vmem (%p29_p4), [#allocation2], %s1878_s23 }
  0x12   : > { %v153_v0 = vld [vmem:[%s136_s26] sm:$0xf] (%p29_p4)  ;;  %v155_v1 = vld [vmem:[%s136_s26 + $0x8] sm:$0xf] (%p29_p4)  ;;  %v157_v2 = vld [vmem:[%s136_s26 + $0x10] sm:$0xf] (%p29_p4) }
  0x13   : > { %154 = vst [vmem:[%s134_s27] sm:$0xf] (%p29_p4), %v153_v0  ;;  %v159_v3 = vld [vmem:[%s136_s26 + $0x18] sm:$0xf] (%p29_p4)  ;;  %v161_v4 = vld [vmem:[%s136_s26 + $0x20] sm:$0xf] (%p29_p4) }
  0x14   : > { %156 = vst [vmem:[%s134_s27 + $0x4] sm:$0xf] %v155_v1  ;;  %v163_v5 = vld [vmem:[%s136_s26 + $0x28] sm:$0xf]  ;;  %v165_v6 = vld [vmem:[%s136_s26 + $0x30] sm:$0xf] }
  0x15   : > { %158 = vst [vmem:[%s134_s27 + $0x8] sm:$0xf] %v157_v2  ;;  %v167_v7 = vld [vmem:[%s136_s26 + $0x38] sm:$0xf] }
  0x16   : > { %160 = vst [vmem:[%s134_s27 + $0xc] sm:$0xf] %v159_v3 }
  0x17   : > { %162 = vst [vmem:[%s134_s27 + $0x10] sm:$0xf] %v161_v4 }
  0x18   : > { %164 = vst [vmem:[%s134_s27 + $0x14] sm:$0xf] %v163_v5 }
  0x19   : > { %166 = vst [vmem:[%s134_s27 + $0x18] sm:$0xf] %v165_v6 }
  0x1a   : > { %168 = vst [vmem:[%s134_s27 + $0x1c] sm:$0xf] %v167_v7 }
  0x1b PF: > { %p1880_p7 = scmp.ge.s32.totalorder %s2548_s14, 1  ;;  %p207_p8 = scmp.lt.s32.totalorder %s2548_s14, 3 }
  0x1d   : > { %p208_p9 = pnand %p1880_p7, %p207_p8 }
  0x1e   : > { %s214_s28 = sand.u32 (!%p208_p9), 1, %s2540_s12   ;;  %s2551_s29 = smov (!%p208_p9), 127  }
  0x1f   : > { %211 = sbr.rel (%p208_p9) target bundleno = 615 (0x267), region = 69  ;;  %s1881_s30 = sshll.u32 (!%p208_p9), %s214_s28, 5 }
  0x20   : > { %s216_s4 = scalar_lea.vmem (!%p208_p9), [#allocation2], %s1881_s30  ;;  %s2552_s5 = smov (!%p208_p9), 126  }
  0x21   : > { %s2553_s6 = smov (!%p208_p9), 119   ;;  %s2554_s7 = smov (!%p208_p9), 118  }
  0x22   : > { %s2555_s8 = smov (!%p208_p9), 110   ;;  %s2556_s9 = smov (!%p208_p9), 109  }
  0x23   : > { %s2557_s10 = smov (!%p208_p9), 117   ;;  %s2558_s11 = smov (!%p208_p9), 108  }
  0x24   : > { %v2550_v8 = vmov 0   ;;  %v2624_v9 = vld [vmem:[%s216_s4 + $0x10] sm:$0xff]  ;;  %v2626_v10 = vld [vmem:[%s216_s4] sm:$0xff]  ;;  %v2630_v11 = vld [vmem:[%s216_s4 + $0x18] sm:$0xff]  ;;  %vm349_vm0 = vcmask 1039360   ;;  %vm616_vm1 = vcmask 1031168  }
  0x25   : > { %341 = vrot.lane.b32.xlu0 %v2550_v8, %s2551_s29  ;;  %2523 = vset.pattern.permute.xlu1 %v2550_v8  ;;  %v2633_v12 = vld [vmem:[%s216_s4 + $0x8] sm:$0xff]  ;;  %vm781_vm2 = vcmask 973824   ;;  %v2405_v30 = vld [vmem:[%s3152_s1 + $0x50] sm:$0xff]  ;;  %v2403_v31 = vld [vmem:[%s3152_s1 + $0x40] sm:$0xff]  ;;  %vm358_vm3 = vcmask 523264   ;;  %vm946_vm4 = vcmask 965632  }
  0x26   : > { %2525 = vset.pattern.permute.xlu0 %v2550_v8  ;;  %2524 = vset.pattern.permute.xlu2 %v2550_v8  ;;  %v2407_v33 = vld [vmem:[%s3152_s1 + $0x60] sm:$0xff]  ;;  %v2409_v34 = vld [vmem:[%s3152_s1 + $0x70] sm:$0xff]  ;;  %v2406_v45 = vld [vmem:[%s3152_s1 + $0x58] sm:$0xff]  ;;  %vm1276_vm5 = vcmask 900096   ;;  %vm1441_vm6 = vcmask 891904   ;;  %vm1111_vm7 = vcmask 957440  }
  0x27   : > { %345 = vrot.lane.b32.xlu1 %v2624_v9, %s2551_s29  ;;  %339 = vrot.lane.b32.xlu2 %v2626_v10, %s2551_s29  ;;  %v2404_v46 = vld [vmem:[%s3152_s1 + $0x48] sm:$0xff]  ;;  %v2410_v48 = vld [vmem:[%s3152_s1 + $0x78] sm:$0xff]  ;;  %vm1606_vm8 = vcmask 883712   ;;  %s1882_s17 = sshll.u32 %s214_s28, 4  ;;  %s2388_s12 = sshll.u32 (%p2609_p5), %s1874_s15, 2 }
  0x28   : > { %v2408_v47 = vld [vmem:[%s3152_s1 + $0x68] sm:$0xff]  ;;  %v2395_v60 = vld [vmem:[%s3152_s1] sm:$0xff]  ;;  %s235_s18 = scalar_lea.vmem [#allocation3], %s1882_s17  ;;  %s1764_s22 = scalar_lea.vmem (%p2609_p5), %s3154_s3, %s2388_s12 }
  0x29   : > { %v2427_v61 = vld [vmem:[%s3152_s1 + $0x100] sm:$0xff] }
  0x2a   : > { %v2411_v62 = vld [vmem:[%s3152_s1 + $0x80] sm:$0xff] }
  0x2b   : > { %v2419_v63 = vld [vmem:[%s3152_s1 + $0xc0] sm:$0xff] }
  0x2d   : > { %347 = vrot.lane.b32.xlu0 %v2630_v11, %s2551_s29 }
  0x2f   : > { %343 = vrot.lane.b32.xlu1 %v2633_v12, %s2551_s29  ;;  %608 = vrot.lane.b32.xlu2 %v2550_v8, %s2552_s5 }
  0x35   : > { %614 = vrot.lane.b32.xlu0 %v2630_v11, %s2552_s5 }
  0x37   : > { %773 = vrot.lane.b32.xlu1 %v2550_v8, %s2553_s6  ;;  %779 = vrot.lane.b32.xlu2 %v2630_v11, %s2553_s6 }
  0x3d   : > { %612 = vrot.lane.b32.xlu0 %v2624_v9, %s2552_s5 }
  0x3f   : > { %777 = vrot.lane.b32.xlu1 %v2624_v9, %s2553_s6  ;;  %610 = vrot.lane.b32.xlu2 %v2633_v12, %s2552_s5 }
  0x45   : > { %775 = vrot.lane.b32.xlu0 %v2633_v12, %s2553_s6 }
  0x47   : > { %938 = vrot.lane.b32.xlu1 %v2550_v8, %s2554_s7  ;;  %944 = vrot.lane.b32.xlu2 %v2630_v11, %s2554_s7 }
  0x4d   : > { %606 = vrot.lane.b32.xlu0 %v2626_v10, %s2552_s5 }
  0x4f   : > { %771 = vrot.lane.b32.xlu1 %v2626_v10, %s2553_s6  ;;  %942 = vrot.lane.b32.xlu2 %v2624_v9, %s2554_s7 }
  0x55   : > { %940 = vrot.lane.b32.xlu0 %v2633_v12, %s2554_s7 }
  0x57   : > { %936 = vrot.lane.b32.xlu1 %v2626_v10, %s2554_s7  ;;  %1268 = vrot.lane.b32.xlu2 %v2550_v8, %s2555_s8 }
  0x5d   : > { %1274 = vrot.lane.b32.xlu0 %v2630_v11, %s2555_s8 }
  0x5f   : > { %1433 = vrot.lane.b32.xlu1 %v2550_v8, %s2556_s9  ;;  %1439 = vrot.lane.b32.xlu2 %v2630_v11, %s2556_s9 }
  0x65   : > { %1103 = vrot.lane.b32.xlu0 %v2550_v8, %s2557_s10 }
  0x67   : > { %1109 = vrot.lane.b32.xlu1 %v2630_v11, %s2557_s10  ;;  %1272 = vrot.lane.b32.xlu2 %v2624_v9, %s2555_s8 }
  0x6d   : > { %1437 = vrot.lane.b32.xlu0 %v2624_v9, %s2556_s9 }
  0x6f   : > { %1107 = vrot.lane.b32.xlu1 %v2624_v9, %s2557_s10  ;;  %1270 = vrot.lane.b32.xlu2 %v2633_v12, %s2555_s8 }
  0x75   : > { %1435 = vrot.lane.b32.xlu0 %v2633_v12, %s2556_s9 }
  0x77   : > { %1598 = vrot.lane.b32.xlu1 %v2550_v8, %s2558_s11  ;;  %1604 = vrot.lane.b32.xlu2 %v2630_v11, %s2558_s11 }
  0x7d   : > { %1105 = vrot.lane.b32.xlu0 %v2633_v12, %s2557_s10 }
  0x7f   : > { %1266 = vrot.lane.b32.xlu1 %v2626_v10, %s2555_s8  ;;  %1431 = vrot.lane.b32.xlu2 %v2626_v10, %s2556_s9 }
  0x81   : > { %v340_v13 = vpop.permute.xlu2 %339 }
  0x85   : > { %1602 = vrot.lane.b32.xlu0 %v2624_v9, %s2558_s11 }
  0x87   : > { %1101 = vrot.lane.b32.xlu1 %v2626_v10, %s2557_s10  ;;  %1600 = vrot.lane.b32.xlu2 %v2633_v12, %s2558_s11 }
  0x89   : > { %v2663_v14 = vpop.permute.xlu2 %608 }
  0x8d   : > { %1596 = vrot.lane.b32.xlu0 %v2626_v10, %s2558_s11 }
  0x91   : > { %v780_v15 = vpop.permute.xlu2 %779 }
  0x97   : > { %v342_v16 = vpop.permute.xlu0 %341 }
  0x98   : > { %v350_v27 = vsel %vm349_vm0, %v340_v13, %v342_v16  ;;  %v2412_v13 = vld [vmem:[%s3152_s1 + $0x88] sm:$0xff] }
  0x99   : > { %v346_v17 = vpop.permute.xlu1 %345  ;;  %v611_v18 = vpop.permute.xlu2 %610 }
  0x9a   : > { %v352_v23 = vsel %vm349_vm0, %v346_v17, %v342_v16  ;;  %v618_v40 = vsel %vm616_vm1, %v611_v18, %v2663_v14 }
  0x9f   : > { %v348_v19 = vpop.permute.xlu0 %347 }
  0xa0   : > { %v353_v20 = vsel %vm349_vm0, %v348_v19, %v342_v16 }
  0xa1   : > { %387 = vmatpush.bf16.msra.mxu0 %v353_v20  ;;  %2478 = vmatpush.bf16.msra.mxu1 %v353_v20  ;;  %v344_v21 = vpop.permute.xlu1 %343  ;;  %v945_v22 = vpop.permute.xlu2 %944 }
  0xa2   : > { %2479 = vmatpush.bf16.msra.mxu2 %v353_v20  ;;  %2480 = vmatpush.bf16.msra.mxu3 %v353_v20  ;;  %v351_v25 = vsel %vm349_vm0, %v344_v21, %v342_v16 }
  0xa5   : > { %388 = vmatpush.bf16.msra.mxu0 %v352_v23  ;;  %2481 = vmatpush.bf16.msra.mxu1 %v352_v23 }
  0xa6   : > { %2482 = vmatpush.bf16.msra.mxu2 %v352_v23  ;;  %2483 = vmatpush.bf16.msra.mxu3 %v352_v23 }
  0xa7   : > { %v615_v24 = vpop.permute.xlu0 %614 }
  0xa8   : > { %v620_v28 = vsel %vm616_vm1, %v615_v24, %v2663_v14 }
  0xa9   : > { %389 = vmatpush.bf16.msra.mxu0 %v351_v25  ;;  %2484 = vmatpush.bf16.msra.mxu1 %v351_v25  ;;  %v774_v26 = vpop.permute.xlu1 %773  ;;  %v943_v32 = vpop.permute.xlu2 %942 }
  0xaa   : > { %2485 = vmatpush.bf16.msra.mxu2 %v351_v25  ;;  %2486 = vmatpush.bf16.msra.mxu3 %v351_v25  ;;  %v785_v29 = vsel %vm781_vm2, %v780_v15, %v774_v26  ;;  %v2397_v25 = vld [vmem:[%s3152_s1 + $0x10] sm:$0xff] }
  0xad   : > { %390 = vmatpush.bf16.msra.mxu0 %v350_v27  ;;  %2487 = vmatpush.bf16.msra.mxu1 %v350_v27 }
  0xae   : > { %2488 = vmatpush.bf16.msra.mxu2 %v350_v27  ;;  %2489 = vmatpush.bf16.msra.mxu3 %v350_v27  ;;  %v2413_v27 = vld [vmem:[%s3152_s1 + $0x90] sm:$0xff] }
  0xaf   : > { %v613_v35 = vpop.permute.xlu0 %612 }
  0xb0   : > { %1949 = vmatmul.msk.bf16.vlgmr.msra.gmra.mxu1 %vm358_vm3, %v2405_v30  ;;  %v619_v36 = vsel %vm616_vm1, %v613_v35, %v2663_v14  ;;  %1947 = vmatmul.msk.bf16.vlgmr.msra.gmra.mxu0 %vm358_vm3, %v2403_v31 }
  0xb1   : > { %1951 = vmatmul.msk.bf16.vlgmr.msra.gmra.mxu2 %vm358_vm3, %v2407_v33  ;;  %1953 = vmatmul.msk.bf16.vlgmr.msra.gmra.mxu3 %vm358_vm3, %v2409_v34  ;;  %v778_v37 = vpop.permute.xlu1 %777  ;;  %v2693_v39 = vpop.permute.xlu2 %1268 }
  0xb2   : > { %653 = vmatpush.bf16.msrb.mxu2 %v620_v28  ;;  %818 = vmatpush.bf16.msrb.mxu3 %v785_v29  ;;  %v784_v38 = vsel %vm781_vm2, %v778_v37, %v774_v26  ;;  %v2421_v28 = vld [vmem:[%s3152_s1 + $0xd0] sm:$0xff] }
  0xb3   : > { %504 = vmatpush.bf16.msrb.mxu1 %v2630_v11  ;;  %v2428_v11 = vld [vmem:[%s3152_s1 + $0x108] sm:$0xff] }
  0xb6   : > { %654 = vmatpush.bf16.msrb.mxu2 %v619_v36  ;;  %819 = vmatpush.bf16.msrb.mxu3 %v784_v38 }
  0xb7   : > { %505 = vmatpush.bf16.msrb.mxu1 %v2624_v9  ;;  %v776_v41 = vpop.permute.xlu0 %775 }
  0xb8   : > { %v783_v42 = vsel %vm781_vm2, %v776_v41, %v774_v26  ;;  %v2430_v41 = vld [vmem:[%s3152_s1 + $0x118] sm:$0xff] }
  0xb9   : > { %v939_v43 = vpop.permute.xlu1 %938  ;;  %v1440_v49 = vpop.permute.xlu2 %1439 }
  0xba   : > { %655 = vmatpush.bf16.msrb.mxu2 %v618_v40  ;;  %820 = vmatpush.bf16.msrb.mxu3 %v783_v42  ;;  %v950_v44 = vsel %vm946_vm4, %v945_v22, %v939_v43  ;;  %v949_v51 = vsel %vm946_vm4, %v943_v32, %v939_v43  ;;  %v2398_v40 = vld [vmem:[%s3152_s1 + $0x18] sm:$0xff] }
  0xbb   : > { %506 = vmatpush.bf16.msrb.mxu1 %v2633_v12  ;;  %983 = vmatpush.bf16.msrb.mxu0 %v950_v44  ;;  %v2422_v42 = vld [vmem:[%s3152_s1 + $0xd8] sm:$0xff] }
  0xbf   : > { %507 = vmatpush.bf16.msrb.mxu1 %v2626_v10  ;;  %v607_v50 = vpop.permute.xlu0 %606  ;;  %984 = vmatpush.bf16.msrb.mxu0 %v949_v51  ;;  %v2396_v10 = vld [vmem:[%s3152_s1 + $0x8] sm:$0xff] }
  0xc0   : > { %1950 = vmatmul.msk.bf16.gmra.mxu1 %vm358_vm3, %v2406_v45  ;;  %v617_v52 = vsel %vm616_vm1, %v607_v50, %v2663_v14  ;;  %1948 = vmatmul.msk.bf16.gmra.mxu0 %vm358_vm3, %v2404_v46  ;;  %v2420_v14 = vld [vmem:[%s3152_s1 + $0xc8] sm:$0xff]  ;;  %v2399_v45 = vld [vmem:[%s3152_s1 + $0x20] sm:$0xff] }
  0xc1   : > { %1952 = vmatmul.msk.bf16.gmra.mxu2 %vm358_vm3, %v2408_v47  ;;  %1954 = vmatmul.msk.bf16.gmra.mxu3 %vm358_vm3, %v2410_v48  ;;  %v772_v53 = vpop.permute.xlu1 %771  ;;  %v1273_v57 = vpop.permute.xlu2 %1272  ;;  %v2431_v46 = vld [vmem:[%s3152_s1 + $0x120] sm:$0xff]  ;;  %v2432_v50 = vld [vmem:[%s3152_s1 + $0x128] sm:$0xff] }
  0xc2   : > { %656 = vmatpush.bf16.msrb.mxu2 %v617_v52  ;;  %v782_v54 = vsel %vm781_vm2, %v772_v53, %v774_v26  ;;  %v1279_v4 = vsel %vm1276_vm5, %v1273_v57, %v2693_v39  ;;  %v2429_v26 = vld [vmem:[%s3152_s1 + $0x110] sm:$0xff]  ;;  %v2415_v47 = vld [vmem:[%s3152_s1 + $0xa0] sm:$0xff]  ;;  %v2416_v51 = vld [vmem:[%s3152_s1 + $0xa8] sm:$0xff] }
  0xc3   : > { %821 = vmatpush.bf16.msrb.mxu3 %v782_v54  ;;  %v2423_v48 = vld [vmem:[%s3152_s1 + $0xe0] sm:$0xff]  ;;  %v2424_v52 = vld [vmem:[%s3152_s1 + $0xe8] sm:$0xff]  ;;  %v2401_v53 = vld [vmem:[%s3152_s1 + $0x30] sm:$0xff] }
  0xc4   : > { %v2433_v54 = vld [vmem:[%s3152_s1 + $0x130] sm:$0xff] }
  0xc7   : > { %v941_v55 = vpop.permute.xlu0 %940 }
  0xc8   : > { %v948_v56 = vsel %vm946_vm4, %v941_v55, %v939_v43 }
  0xc9   : > { %985 = vmatpush.bf16.msrb.mxu0 %v948_v56  ;;  %v937_v58 = vpop.permute.xlu1 %936  ;;  %v1271_v2 = vpop.permute.xlu2 %1270  ;;  %v2417_v56 = vld [vmem:[%s3152_s1 + $0xb0] sm:$0xff] }
  0xca   : > { %v947_v59 = vsel %vm946_vm4, %v937_v58, %v939_v43  ;;  %v1278_v7 = vsel %vm1276_vm5, %v1271_v2, %v2693_v39  ;;  %v2425_v58 = vld [vmem:[%s3152_s1 + $0xf0] sm:$0xff]  ;;  %v2434_v2 = vld [vmem:[%s3152_s1 + $0x138] sm:$0xff] }
  0xcd   : > { %986 = vmatpush.bf16.msrb.mxu0 %v947_v59 }
  0xcf   : > { %v1275_v0 = vpop.permute.xlu0 %1274 }
  0xd0   : > { %v1280_v1 = vsel %vm1276_vm5, %v1275_v0, %v2693_v39  ;;  %1987 = vmatmul.msk.bf16.vlgmr.msrb.gmra.mxu1 %vm358_vm3, %v2395_v60  ;;  %2155 = vmatmul.msk.bf16.vlgmr.msrb.gmra.mxu0 %vm358_vm3, %v2427_v61 }
  0xd1   : > { %2043 = vmatmul.msk.bf16.vlgmr.msrb.gmra.mxu2 %vm358_vm3, %v2411_v62  ;;  %2099 = vmatmul.msk.bf16.vlgmr.msrb.gmra.mxu3 %vm358_vm3, %v2419_v63  ;;  %v1434_v3 = vpop.permute.xlu1 %1433  ;;  %v1605_v12 = vpop.permute.xlu2 %1604 }
  0xd2   : > { %1313 = vmatpush.bf16.msra.mxu2 %v1280_v1  ;;  %v1445_v5 = vsel %vm1441_vm6, %v1440_v49, %v1434_v3  ;;  %v2400_v49 = vld [vmem:[%s3152_s1 + $0x28] sm:$0xff]  ;;  %v2402_v1 = vld [vmem:[%s3152_s1 + $0x38] sm:$0xff] }
  0xd3   : > { %1478 = vmatpush.bf16.msra.mxu3 %v1445_v5 }
  0xd6   : > { %1314 = vmatpush.bf16.msra.mxu2 %v1279_v4  ;;  %v2418_v4 = vld [vmem:[%s3152_s1 + $0xb8] sm:$0xff] }
  0xd7   : > { %v1104_v6 = vpop.permute.xlu0 %1103 }
  0xd9   : > { %v1110_v8 = vpop.permute.xlu1 %1109  ;;  %v1432_v19 = vpop.permute.xlu2 %1431 }
  0xda   : > { %1315 = vmatpush.bf16.msra.mxu2 %v1278_v7  ;;  %v1115_v9 = vsel %vm1111_vm7, %v1110_v8, %v1104_v6  ;;  %v1442_v22 = vsel %vm1441_vm6, %v1432_v19, %v1434_v3  ;;  %v2451_v19 = vld [vmem:[%s3152_s1 + $0x1c0] sm:$0xff] }
  0xdb   : > { %1148 = vmatpush.bf16.msra.mxu1 %v1115_v9 }
  0xdf   : > { %v1438_v15 = vpop.permute.xlu0 %1437 }
  0xe0   : > { %1988 = vmatmul.msk.bf16.gmra.mxu1 %vm358_vm3, %v2396_v10  ;;  %v1444_v16 = vsel %vm1441_vm6, %v1438_v15, %v1434_v3  ;;  %2156 = vmatmul.msk.bf16.gmra.mxu0 %vm358_vm3, %v2428_v11 }
  0xe1   : > { %2044 = vmatmul.msk.bf16.gmra.mxu2 %vm358_vm3, %v2412_v13  ;;  %1479 = vmatpush.bf16.msra.mxu3 %v1444_v16  ;;  %v1108_v17 = vpop.permute.xlu1 %1107  ;;  %v1601_v33 = vpop.permute.xlu2 %1600  ;;  %v2435_v13 = vld [vmem:[%s3152_s1 + $0x140] sm:$0xff] }
  0xe2   : > { %2100 = vmatmul.msk.bf16.gmra.mxu3 %vm358_vm3, %v2420_v14  ;;  %v1114_v18 = vsel %vm1111_vm7, %v1108_v17, %v1104_v6  ;;  %v2459_v14 = vld [vmem:[%s3152_s1 + $0x200] sm:$0xff] }
  0xe3   : > { %1149 = vmatpush.bf16.msra.mxu1 %v1114_v18  ;;  %v2443_v16 = vld [vmem:[%s3152_s1 + $0x180] sm:$0xff] }
  0xe7   : > { %v1436_v20 = vpop.permute.xlu0 %1435 }
  0xe8   : > { %v1443_v21 = vsel %vm1441_vm6, %v1436_v20, %v1434_v3 }
  0xe9   : > { %1480 = vmatpush.bf16.msra.mxu3 %v1443_v21  ;;  %v1599_v23 = vpop.permute.xlu1 %1598 }
  0xea   : > { %v1610_v24 = vsel %vm1606_vm8, %v1605_v12, %v1599_v23  ;;  %v1608_v36 = vsel %vm1606_vm8, %v1601_v33, %v1599_v23 }
  0xeb   : > { %1643 = vmatpush.bf16.msra.mxu0 %v1610_v24 }
  0xed   : > { %1481 = vmatpush.bf16.msra.mxu3 %v1442_v22 }
  0xef   : > { %v1106_v29 = vpop.permute.xlu0 %1105 }
  0xf0   : > { %1989 = vmatmul.msk.bf16.gmra.mxu1 %vm358_vm3, %v2397_v25  ;;  %v1113_v30 = vsel %vm1111_vm7, %v1106_v29, %v1104_v6  ;;  %2157 = vmatmul.msk.bf16.gmra.mxu0 %vm358_vm3, %v2429_v26 }
  0xf1   : > { %2045 = vmatmul.msk.bf16.gmra.mxu2 %vm358_vm3, %v2413_v27  ;;  %1150 = vmatpush.bf16.msra.mxu1 %v1113_v30  ;;  %v1267_v31 = vpop.permute.xlu1 %1266  ;;  %v2436_v30 = vld [vmem:[%s3152_s1 + $0x148] sm:$0xff] }
  0xf2   : > { %2101 = vmatmul.msk.bf16.gmra.mxu3 %vm358_vm3, %v2421_v28  ;;  %v1277_v32 = vsel %vm1276_vm5, %v1267_v31, %v2693_v39  ;;  %v2414_v39 = vld [vmem:[%s3152_s1 + $0x98] sm:$0xff]  ;;  %v2460_v31 = vld [vmem:[%s3152_s1 + $0x208] sm:$0xff] }
  0xf3   : > { %1316 = vmatpush.bf16.msra.mxu2 %v1277_v32 }
  0xf7   : > { %v1603_v34 = vpop.permute.xlu0 %1602 }
  0xf8   : > { %v1609_v35 = vsel %vm1606_vm8, %v1603_v34, %v1599_v23  ;;  %v2444_v34 = vld [vmem:[%s3152_s1 + $0x188] sm:$0xff] }
  0xf9   : > { %1644 = vmatpush.bf16.msra.mxu0 %v1609_v35  ;;  %v1102_v37 = vpop.permute.xlu1 %1101 }
  0xfa   : > { %v1112_v38 = vsel %vm1111_vm7, %v1102_v37, %v1104_v6  ;;  %v2426_v6 = vld [vmem:[%s3152_s1 + $0xf8] sm:$0xff]  ;;  %v2452_v37 = vld [vmem:[%s3152_s1 + $0x1c8] sm:$0xff] }
  0xfb   : > { %1151 = vmatpush.bf16.msra.mxu1 %v1112_v38 }
  0xfd   : > { %1645 = vmatpush.bf16.msra.mxu0 %v1608_v36 }
  0xff   : > { %v1597_v43 = vpop.permute.xlu0 %1596 }
 0x100   : > { %1990 = vmatmul.msk.bf16.gmra.mxu1 %vm358_vm3, %v2398_v40  ;;  %v1607_v44 = vsel %vm1606_vm8, %v1597_v43, %v1599_v23  ;;  %2158 = vmatmul.msk.bf16.gmra.mxu0 %vm358_vm3, %v2430_v41 }
 0x101   : > { %2046 = vmatmul.msk.bf16.gmra.mxu2 %vm358_vm3, %v2414_v39  ;;  %1646 = vmatpush.bf16.msra.mxu0 %v1607_v44 }
 0x102   : > { %2102 = vmatmul.msk.bf16.gmra.mxu3 %vm358_vm3, %v2422_v42 }
 0x110   : > { %1991 = vmatmul.msk.bf16.gmra.mxu1 %vm358_vm3, %v2399_v45  ;;  %2159 = vmatmul.msk.bf16.gmra.mxu0 %vm358_vm3, %v2431_v46 }
 0x111   : > { %2047 = vmatmul.msk.bf16.gmra.mxu2 %vm358_vm3, %v2415_v47 }
 0x112   : > { %2103 = vmatmul.msk.bf16.gmra.mxu3 %vm358_vm3, %v2423_v48 }
 0x120   : > { %1992 = vmatmul.msk.bf16.gmra.mxu1 %vm358_vm3, %v2400_v49  ;;  %2160 = vmatmul.msk.bf16.gmra.mxu0 %vm358_vm3, %v2432_v50  ;;  %v2437_v49 = vld [vmem:[%s3152_s1 + $0x150] sm:$0xff] }
 0x121   : > { %2048 = vmatmul.msk.bf16.gmra.mxu2 %vm358_vm3, %v2416_v51  ;;  %v2461_v50 = vld [vmem:[%s3152_s1 + $0x210] sm:$0xff] }
 0x122   : > { %2104 = vmatmul.msk.bf16.gmra.mxu3 %vm358_vm3, %v2424_v52 }
 0x12d   : > { %v2846_v55 = vpop.f32.mrf.mxu1  ;;  %v392_v57 = vpop.f32.mrf.mxu0 }
 0x130   : > { %1993 = vmatmul.msk.bf16.gmra.mxu1 %vm358_vm3, %v2401_v53  ;;  %2161 = vmatmul.msk.bf16.gmra.mxu0 %vm358_vm3, %v2433_v54  ;;  %v2445_v54 = vld [vmem:[%s3152_s1 + $0x190] sm:$0xff] }
 0x131   : > { %2049 = vmatmul.msk.bf16.gmra.mxu2 %vm358_vm3, %v2417_v56 }
 0x132   : > { %2105 = vmatmul.msk.bf16.gmra.mxu3 %vm358_vm3, %v2425_v58 }
 0x134   : > { %v2858_v59 = vpop.f32.mrf.mxu2  ;;  %v2860_v60 = vpop.f32.mrf.mxu3 }
 0x135   : > { %v2862_v61 = vpop.f32.mrf.mxu1  ;;  %v394_v62 = vpop.f32.mrf.mxu0 }
 0x13c   : > { %v2864_v63 = vpop.f32.mrf.mxu2  ;;  %v2866_v0 = vpop.f32.mrf.mxu3 }
 0x13d   : > { %v2874_v3 = vpop.f32.mrf.mxu1  ;;  %v397_v5 = vpop.f32.mrf.mxu0 }
 0x140   : > { %1994 = vmatmul.msk.bf16.gmra.mxu1 %vm358_vm3, %v2402_v1  ;;  %2162 = vmatmul.msk.bf16.gmra.mxu0 %vm358_vm3, %v2434_v2 }
 0x141   : > { %2050 = vmatmul.msk.bf16.gmra.mxu2 %vm358_vm3, %v2418_v4 }
 0x142   : > { %2106 = vmatmul.msk.bf16.gmra.mxu3 %vm358_vm3, %v2426_v6 }
 0x144   : > { %v2886_v7 = vpop.f32.mrf.mxu2  ;;  %v2888_v8 = vpop.f32.mrf.mxu3 }
 0x145   : > { %v2890_v9 = vpop.f32.mrf.mxu1  ;;  %v399_v10 = vpop.f32.mrf.mxu0 }
 0x14c   : > { %v2892_v11 = vpop.f32.mrf.mxu2  ;;  %v2894_v12 = vpop.f32.mrf.mxu3 }
 0x14d   : > { %v509_v15 = vpop.f32.mrf.mxu1  ;;  %v988_v17 = vpop.f32.mrf.mxu0 }
 0x14e   : > { %v510_v18 = vadd.f32 %v509_v15, %v392_v57  ;;  %v2453_v57 = vld [vmem:[%s3152_s1 + $0x1d0] sm:$0xff] }
 0x150   : > { %2211 = vmatmul.msk.bf16.vlgmr.msra.gmra.mxu1 %vm358_vm3, %v2435_v13  ;;  %2379 = vmatmul.msk.bf16.vlgmr.msra.gmra.mxu0 %vm358_vm3, %v2459_v14 }
 0x151   : > { %2267 = vmatmul.msk.bf16.vlgmr.msra.gmra.mxu2 %vm358_vm3, %v2443_v16  ;;  %v2438_v16 = vld [vmem:[%s3152_s1 + $0x158] sm:$0xff] }
 0x152   : > { %2323 = vmatmul.msk.bf16.vlgmr.msra.gmra.mxu3 %vm358_vm3, %v2451_v19 }
 0x154   : > { %v658_v20 = vpop.f32.mrf.mxu2  ;;  %v823_v21 = vpop.f32.mrf.mxu3 }
 0x155   : > { %v698_v22 = vadd.f32 %v658_v20, %v510_v18  ;;  %v511_v23 = vpop.f32.mrf.mxu1  ;;  %v990_v24 = vpop.f32.mrf.mxu0 }
 0x156   : > { %v512_v25 = vadd.f32 %v511_v23, %v394_v62 }
 0x157   : > { %v863_v26 = vadd.f32 %v823_v21, %v698_v22  ;;  %v2454_v22 = vld [vmem:[%s3152_s1 + $0x1d8] sm:$0xff] }
 0x159   : > { %v2912_v27 = vadd.f32 %v988_v17, %v863_v26  ;;  %v2462_v17 = vld [vmem:[%s3152_s1 + $0x218] sm:$0xff] }
 0x15c   : > { %v660_v28 = vpop.f32.mrf.mxu2  ;;  %v825_v29 = vpop.f32.mrf.mxu3 }
 0x15d   : > { %v699_v32 = vadd.f32 %v660_v28, %v512_v25  ;;  %v514_v33 = vpop.f32.mrf.mxu1  ;;  %v993_v35 = vpop.f32.mrf.mxu0 }
 0x15e   : > { %v515_v36 = vadd.f32 %v514_v33, %v397_v5 }
 0x15f   : > { %v864_v38 = vadd.f32 %v825_v29, %v699_v32 }
 0x160   : > { %2212 = vmatmul.msk.bf16.gmra.mxu1 %vm358_vm3, %v2436_v30  ;;  %2380 = vmatmul.msk.bf16.gmra.mxu0 %vm358_vm3, %v2460_v31 }
 0x161   : > { %v2928_v40 = vadd.f32 %v990_v24, %v864_v38  ;;  %2268 = vmatmul.msk.bf16.gmra.mxu2 %vm358_vm3, %v2444_v34 }
 0x162   : > { %2324 = vmatmul.msk.bf16.gmra.mxu3 %vm358_vm3, %v2452_v37 }
 0x164   : > { %v663_v41 = vpop.f32.mrf.mxu2 }
 0x165   : > { %v700_v39 = vadd.f32 %v663_v41, %v515_v36  ;;  %v516_v42 = vpop.f32.mrf.mxu1  ;;  %v828_v43 = vpop.f32.mrf.mxu3  ;;  %v2463_v36 = vld [vmem:[%s3152_s1 + $0x220] sm:$0xff] }
 0x166   : > { %v517_v44 = vadd.f32 %v516_v42, %v399_v10  ;;  %v995_v45 = vpop.f32.mrf.mxu0 }
 0x167   : > { %v865_v46 = vadd.f32 %v828_v43, %v700_v39  ;;  %v2455_v39 = vld [vmem:[%s3152_s1 + $0x1e0] sm:$0xff] }
 0x169   : > { %v2932_v47 = vadd.f32 %v993_v35, %v865_v46  ;;  %v2439_v35 = vld [vmem:[%s3152_s1 + $0x160] sm:$0xff] }
 0x16c   : > { %v665_v48 = vpop.f32.mrf.mxu2 }
 0x16d   : > { %v701_v51 = vadd.f32 %v665_v48, %v517_v44  ;;  %v519_v52 = vpop.f32.mrf.mxu1  ;;  %v830_v53 = vpop.f32.mrf.mxu3 }
 0x16e   : > { %v520_v56 = vadd.f32 %v519_v52, %v2846_v55  ;;  %v998_v58 = vpop.f32.mrf.mxu0 }
 0x16f   : > { %v866_v62 = vadd.f32 %v830_v53, %v701_v51 }
 0x170   : > { %2213 = vmatmul.msk.bf16.gmra.mxu1 %vm358_vm3, %v2437_v49  ;;  %2381 = vmatmul.msk.bf16.gmra.mxu0 %vm358_vm3, %v2461_v50 }
 0x171   : > { %v2949_v1 = vadd.f32 %v995_v45, %v866_v62  ;;  %2269 = vmatmul.msk.bf16.gmra.mxu2 %vm358_vm3, %v2445_v54 }
 0x172   : > { %2325 = vmatmul.msk.bf16.gmra.mxu3 %vm358_vm3, %v2453_v57  ;;  %v2440_v57 = vld [vmem:[%s3152_s1 + $0x168] sm:$0xff] }
 0x174   : > { %v668_v2 = vpop.f32.mrf.mxu2 }
 0x175   : > { %v702_v4 = vadd.f32 %v668_v2, %v520_v56  ;;  %v521_v5 = vpop.f32.mrf.mxu1  ;;  %v833_v55 = vpop.f32.mrf.mxu3 }
 0x176   : > { %v522_v6 = vadd.f32 %v521_v5, %v2862_v61  ;;  %v1000_v10 = vpop.f32.mrf.mxu0  ;;  %v2446_v61 = vld [vmem:[%s3152_s1 + $0x198] sm:$0xff] }
 0x177   : > { %v867_v13 = vadd.f32 %v833_v55, %v702_v4  ;;  %v2448_v4 = vld [vmem:[%s3152_s1 + $0x1a8] sm:$0xff] }
 0x179   : > { %v2954_v14 = vadd.f32 %v998_v58, %v867_v13  ;;  %v2464_v58 = vld [vmem:[%s3152_s1 + $0x228] sm:$0xff] }
 0x17c   : > { %v670_v15 = vpop.f32.mrf.mxu2 }
 0x17d   : > { %v703_v18 = vadd.f32 %v670_v15, %v522_v6  ;;  %v524_v19 = vpop.f32.mrf.mxu1  ;;  %v835_v20 = vpop.f32.mrf.mxu3 }
 0x17e   : > { %v525_v21 = vadd.f32 %v524_v19, %v2874_v3  ;;  %v1003_v23 = vpop.f32.mrf.mxu0 }
 0x17f   : > { %v868_v24 = vadd.f32 %v835_v20, %v703_v18 }
 0x180   : > { %2214 = vmatmul.msk.bf16.gmra.mxu1 %vm358_vm3, %v2438_v16  ;;  %2382 = vmatmul.msk.bf16.gmra.mxu0 %vm358_vm3, %v2462_v17 }
 0x181   : > { %v2971_v25 = vadd.f32 %v1000_v10, %v868_v24  ;;  %2270 = vmatmul.msk.bf16.gmra.mxu2 %vm358_vm3, %v2446_v61  ;;  %v1716_v61 = vld [vmem:[%s3153_s2] sm:$0xff] }
 0x182   : > { %2326 = vmatmul.msk.bf16.gmra.mxu3 %vm358_vm3, %v2454_v22  ;;  %1722 = vperm.xlu1 %2523, %v1716_v61  }
 0x184   : > { %v673_v26 = vpop.f32.mrf.mxu2 }
 0x185   : > { %v704_v28 = vadd.f32 %v673_v26, %v525_v21  ;;  %v526_v29 = vpop.f32.mrf.mxu1  ;;  %v838_v3 = vpop.f32.mrf.mxu3 }
 0x186   : > { %v527_v30 = vadd.f32 %v526_v29, %v2890_v9  ;;  %v1005_v31 = vpop.f32.mrf.mxu0  ;;  %v2447_v9 = vld [vmem:[%s3152_s1 + $0x1a0] sm:$0xff]  ;;  %v2449_v29 = vld [vmem:[%s3152_s1 + $0x1b0] sm:$0xff] }
 0x187   : > { %v869_v32 = vadd.f32 %v838_v3, %v704_v28 }
 0x189   : > { %v2976_v33 = vadd.f32 %v1003_v23, %v869_v32  ;;  %v2465_v23 = vld [vmem:[%s3152_s1 + $0x230] sm:$0xff] }
 0x18c   : > { %v675_v34 = vpop.f32.mrf.mxu2 }
 0x18d   : > { %v705_v37 = vadd.f32 %v675_v34, %v527_v30  ;;  %v529_v38 = vpop.f32.mrf.mxu1  ;;  %v840_v41 = vpop.f32.mrf.mxu3 }
 0x18e   : > { %v1008_v42 = vpop.f32.mrf.mxu0  ;;  %v530_v45 = vadd.f32 %v529_v38, %v2858_v59 }
 0x18f   : > { %v870_v43 = vadd.f32 %v840_v41, %v705_v37 }
 0x190   : > { %2215 = vmatmul.msk.bf16.gmra.mxu1 %vm358_vm3, %v2439_v35  ;;  %2383 = vmatmul.msk.bf16.gmra.mxu0 %vm358_vm3, %v2463_v36 }
 0x191   : > { %v2992_v44 = vadd.f32 %v1005_v31, %v870_v43  ;;  %2271 = vmatmul.msk.bf16.gmra.mxu2 %vm358_vm3, %v2447_v9 }
 0x192   : > { %2327 = vmatmul.msk.bf16.gmra.mxu3 %vm358_vm3, %v2455_v39  ;;  %v1718_v39 = vld [vmem:[%s3153_s2 + $0x10] sm:$0xff] }
 0x193   : > { %1732 = vperm.xlu0 %2525, %v1718_v39  }
 0x194   : > { %v678_v46 = vpop.f32.mrf.mxu2 }
 0x195   : > { %v706_v48 = vadd.f32 %v678_v46, %v530_v45  ;;  %v531_v49 = vpop.f32.mrf.mxu1  ;;  %v843_v50 = vpop.f32.mrf.mxu3  ;;  %v2466_v45 = vld [vmem:[%s3152_s1 + $0x238] sm:$0xff] }
 0x196   : > { %v1010_v51 = vpop.f32.mrf.mxu0  ;;  %v532_v54 = vadd.f32 %v531_v49, %v2864_v63  ;;  %v2456_v63 = vld [vmem:[%s3152_s1 + $0x1e8] sm:$0xff]  ;;  %v1719_v46 = vld [vmem:[%s3153_s2 + $0x18] sm:$0xff] }
 0x197   : > { %v871_v52 = vadd.f32 %v843_v50, %v706_v48  ;;  %1737 = vperm.xlu1 %2523, %v1719_v46  }
 0x199   : > { %v2997_v53 = vadd.f32 %v1008_v42, %v871_v52 }
 0x19c   : > { %v680_v56 = vpop.f32.mrf.mxu2 }
 0x19d   : > { %v707_v59 = vadd.f32 %v680_v56, %v532_v54  ;;  %v534_v62 = vpop.f32.mrf.mxu1  ;;  %v845_v2 = vpop.f32.mrf.mxu3 }
 0x19e   : > { %v1013_v5 = vpop.f32.mrf.mxu0  ;;  %v535_v10 = vadd.f32 %v534_v62, %v2886_v7  ;;  %v2441_v7 = vld [vmem:[%s3152_s1 + $0x170] sm:$0xff] }
 0x19f   : > { %v872_v55 = vadd.f32 %v845_v2, %v707_v59 }
 0x1a0   : > { %2216 = vmatmul.msk.bf16.gmra.mxu1 %vm358_vm3, %v2440_v57  ;;  %2384 = vmatmul.msk.bf16.gmra.mxu0 %vm358_vm3, %v2464_v58 }
 0x1a1   : > { %v3014_v6 = vadd.f32 %v1010_v51, %v872_v55  ;;  %2272 = vmatmul.msk.bf16.gmra.mxu2 %vm358_vm3, %v2448_v4  ;;  %v2458_v51 = vld [vmem:[%s3152_s1 + $0x1f8] sm:$0xff]  ;;  %v1717_v55 = vld [vmem:[%s3153_s2 + $0x8] sm:$0xff] }
 0x1a2   : > { %2328 = vmatmul.msk.bf16.gmra.mxu3 %vm358_vm3, %v2456_v63  ;;  %1727 = vperm.xlu2 %2524, %v1717_v55  }
 0x1a4   : > { %v683_v13 = vpop.f32.mrf.mxu2 }
 0x1a5   : > { %v708_v15 = vadd.f32 %v683_v13, %v535_v10  ;;  %v536_v16 = vpop.f32.mrf.mxu1  ;;  %v848_v17 = vpop.f32.mrf.mxu3 }
 0x1a6   : > { %v1015_v18 = vpop.f32.mrf.mxu0  ;;  %v537_v21 = vadd.f32 %v536_v16, %v2892_v11  ;;  %v2457_v11 = vld [vmem:[%s3152_s1 + $0x1f0] sm:$0xff] }
 0x1a7   : > { %v873_v19 = vadd.f32 %v848_v17, %v708_v15 }
 0x1a9   : > { %v3019_v20 = vadd.f32 %v1013_v5, %v873_v19 }
 0x1ac   : > { %v685_v22 = vpop.f32.mrf.mxu2 }
 0x1ad   : > { %v709_v24 = vadd.f32 %v685_v22, %v537_v21  ;;  %v539_v26 = vpop.f32.mrf.mxu1  ;;  %v850_v28 = vpop.f32.mrf.mxu3 }
 0x1ae   : > { %v1018_v3 = vpop.f32.mrf.mxu0  ;;  %v540_v32 = vadd.f32 %v539_v26, %v2860_v60  ;;  %v2442_v60 = vld [vmem:[%s3152_s1 + $0x178] sm:$0xff] }
 0x1af   : > { %v874_v30 = vadd.f32 %v850_v28, %v709_v24 }
 0x1b0   : > { %2217 = vmatmul.msk.bf16.gmra.mxu1 %vm358_vm3, %v2441_v7  ;;  %2385 = vmatmul.msk.bf16.gmra.mxu0 %vm358_vm3, %v2465_v23 }
 0x1b1   : > { %v3039_v31 = vadd.f32 %v1015_v18, %v874_v30  ;;  %2273 = vmatmul.msk.bf16.gmra.mxu2 %vm358_vm3, %v2449_v29 }
 0x1b2   : > { %2329 = vmatmul.msk.bf16.gmra.mxu3 %vm358_vm3, %v2457_v11 }
 0x1b4   : > { %v688_v34 = vpop.f32.mrf.mxu2 }
 0x1b5   : > { %v710_v35 = vadd.f32 %v688_v34, %v540_v32  ;;  %v541_v36 = vpop.f32.mrf.mxu1  ;;  %v853_v37 = vpop.f32.mrf.mxu3 }
 0x1b6   : > { %v1020_v38 = vpop.f32.mrf.mxu0  ;;  %v542_v42 = vadd.f32 %v541_v36, %v2866_v0  ;;  %v2450_v0 = vld [vmem:[%s3152_s1 + $0x1b8] sm:$0xff] }
 0x1b7   : > { %v875_v41 = vadd.f32 %v853_v37, %v710_v35 }
 0x1b9   : > { %v3044_v9 = vadd.f32 %v1018_v3, %v875_v41 }
 0x1bc   : > { %v690_v43 = vpop.f32.mrf.mxu2 }
 0x1bd   : > { %v711_v48 = vadd.f32 %v690_v43, %v542_v42  ;;  %v544_v49 = vpop.f32.mrf.mxu1  ;;  %v855_v50 = vpop.f32.mrf.mxu3 }
 0x1be   : > { %v1023_v52 = vpop.f32.mrf.mxu0  ;;  %v545_v57 = vadd.f32 %v544_v49, %v2888_v8 }
 0x1bf   : > { %v876_v54 = vadd.f32 %v855_v50, %v711_v48 }
 0x1c0   : > { %2218 = vmatmul.msk.bf16.gmra.mxu1 %vm358_vm3, %v2442_v60  ;;  %2386 = vmatmul.msk.bf16.gmra.mxu0 %vm358_vm3, %v2466_v45 }
 0x1c1   : > { %v3067_v56 = vadd.f32 %v1020_v38, %v876_v54  ;;  %2274 = vmatmul.msk.bf16.gmra.mxu2 %vm358_vm3, %v2450_v0 }
 0x1c2   : > { %2330 = vmatmul.msk.bf16.gmra.mxu3 %vm358_vm3, %v2458_v51 }
 0x1c4   : > { %v693_v58 = vpop.f32.mrf.mxu2 }
 0x1c5   : > { %v712_v59 = vadd.f32 %v693_v58, %v545_v57  ;;  %v546_v62 = vpop.f32.mrf.mxu1  ;;  %v858_v2 = vpop.f32.mrf.mxu3 }
 0x1c6   : > { %v1025_v4 = vpop.f32.mrf.mxu0  ;;  %v547_v10 = vadd.f32 %v546_v62, %v2894_v12 }
 0x1c7   : > { %v877_v63 = vadd.f32 %v858_v2, %v712_v59 }
 0x1c9   : > { %v3072_v5 = vadd.f32 %v1023_v52, %v877_v63 }
 0x1cc   : > { %v695_v13 = vpop.f32.mrf.mxu2 }
 0x1cd   : > { %v713_v15 = vadd.f32 %v695_v13, %v547_v10  ;;  %v860_v16 = vpop.f32.mrf.mxu3  ;;  %v1153_v17 = vpop.f32.mrf.mxu1 }
 0x1ce   : > { %v1193_v8 = vadd.f32 %v1153_v17, %v2912_v27  ;;  %v1648_v18 = vpop.f32.mrf.mxu0 }
 0x1cf   : > { %v878_v19 = vadd.f32 %v860_v16, %v713_v15 }
 0x1d1   : > { %v3079_v61 = vadd.f32 %v1025_v4, %v878_v19 }
 0x1d4   : > { %v1318_v21 = vpop.f32.mrf.mxu2 }
 0x1d5   : > { %v1358_v22 = vadd.f32 %v1318_v21, %v1193_v8  ;;  %v1155_v7 = vpop.f32.mrf.mxu1  ;;  %v1483_v23 = vpop.f32.mrf.mxu3 }
 0x1d6   : > { %v1194_v24 = vadd.f32 %v1155_v7, %v2928_v40  ;;  %v1650_v26 = vpop.f32.mrf.mxu0 }
 0x1d7   : > { %v1523_v28 = vadd.f32 %v1483_v23, %v1358_v22 }
 0x1d9   : > { %v3082_v29 = vadd.f32 %v1648_v18, %v1523_v28 }
 0x1dc   : > { %v1320_v12 = vpop.f32.mrf.mxu2 }
 0x1dd   : > { %v1359_v11 = vadd.f32 %v1320_v12, %v1194_v24  ;;  %v1158_v3 = vpop.f32.mrf.mxu1  ;;  %v1485_v30 = vpop.f32.mrf.mxu3 }
 0x1de   : > { %v1195_v27 = vadd.f32 %v1158_v3, %v2932_v47  ;;  %v1653_v32 = vpop.f32.mrf.mxu0 }
 0x1df   : > { %v1524_v34 = vadd.f32 %v1485_v30, %v1359_v11 }
 0x1e1   : > { %v3085_v35 = vadd.f32 %v1650_v26, %v1524_v34 }
 0x1e4   : > { %v1323_v36 = vpop.f32.mrf.mxu2 }
 0x1e5   : > { %v1360_v37 = vadd.f32 %v1323_v36, %v1195_v27  ;;  %v1160_v38 = vpop.f32.mrf.mxu1  ;;  %v1488_v41 = vpop.f32.mrf.mxu3 }
 0x1e6   : > { %v1196_v40 = vadd.f32 %v1160_v38, %v2949_v1  ;;  %v1655_v39 = vpop.f32.mrf.mxu0 }
 0x1e7   : > { %v1525_v42 = vadd.f32 %v1488_v41, %v1360_v37 }
 0x1e9   : > { %v3088_v43 = vadd.f32 %v1653_v32, %v1525_v42 }
 0x1ec   : > { %v1325_v60 = vpop.f32.mrf.mxu2 }
 0x1ed   : > { %v1361_v45 = vadd.f32 %v1325_v60, %v1196_v40  ;;  %v1163_v46 = vpop.f32.mrf.mxu1  ;;  %v1490_v48 = vpop.f32.mrf.mxu3 }
 0x1ee   : > { %v1197_v47 = vadd.f32 %v1163_v46, %v2954_v14  ;;  %v1658_v49 = vpop.f32.mrf.mxu0 }
 0x1ef   : > { %v1526_v50 = vadd.f32 %v1490_v48, %v1361_v45 }
 0x1f1   : > { %v3091_v0 = vadd.f32 %v1655_v39, %v1526_v50 }
 0x1f4   : > { %v1328_v51 = vpop.f32.mrf.mxu2 }
 0x1f5   : > { %v1362_v52 = vadd.f32 %v1328_v51, %v1197_v47  ;;  %v1165_v54 = vpop.f32.mrf.mxu1  ;;  %v1493_v57 = vpop.f32.mrf.mxu3 }
 0x1f6   : > { %v1198_v1 = vadd.f32 %v1165_v54, %v2971_v25  ;;  %v1660_v58 = vpop.f32.mrf.mxu0 }
 0x1f7   : > { %v1527_v59 = vadd.f32 %v1493_v57, %v1362_v52 }
 0x1f9   : > { %v3094_v62 = vadd.f32 %v1658_v49, %v1527_v59 }
 0x1fb   : > { %v1704_v2 = vmax.f32 %v3082_v29, %v3094_v62 }
 0x1fc   : > { %v1330_v4 = vpop.f32.mrf.mxu2 }
 0x1fd   : > { %v1363_v63 = vadd.f32 %v1330_v4, %v1198_v1  ;;  %v1168_v14 = vpop.f32.mrf.mxu1  ;;  %v1495_v55 = vpop.f32.mrf.mxu3 }
 0x1fe   : > { %v1199_v10 = vadd.f32 %v1168_v14, %v2976_v33  ;;  %v1663_v13 = vpop.f32.mrf.mxu0 }
 0x1ff   : > { %v1528_v15 = vadd.f32 %v1495_v55, %v1363_v63 }
 0x201   : > { %v3099_v16 = vadd.f32 %v1660_v58, %v1528_v15 }
 0x203   : > { %v1705_v25 = vmax.f32 %v3085_v35, %v3099_v16 }
 0x204   : > { %v1333_v17 = vpop.f32.mrf.mxu2 }
 0x205   : > { %v1364_v8 = vadd.f32 %v1333_v17, %v1199_v10  ;;  %v1170_v18 = vpop.f32.mrf.mxu1  ;;  %v1498_v19 = vpop.f32.mrf.mxu3 }
 0x206   : > { %v1200_v21 = vadd.f32 %v1170_v18, %v2992_v44  ;;  %v1665_v22 = vpop.f32.mrf.mxu0 }
 0x207   : > { %v1529_v7 = vadd.f32 %v1498_v19, %v1364_v8 }
 0x209   : > { %v3104_v23 = vadd.f32 %v1663_v13, %v1529_v7 }
 0x20b   : > { %v1706_v33 = vmax.f32 %v3088_v43, %v3104_v23 }
 0x20c   : > { %v1335_v24 = vpop.f32.mrf.mxu2 }
 0x20d   : > { %v1365_v26 = vadd.f32 %v1335_v24, %v1200_v21  ;;  %v1173_v28 = vpop.f32.mrf.mxu1  ;;  %v1500_v29 = vpop.f32.mrf.mxu3 }
 0x20e   : > { %v1668_v12 = vpop.f32.mrf.mxu0  ;;  %v1201_v47 = vadd.f32 %v1173_v28, %v2997_v53  ;;  %v1723_v24 = vpop.permute.xlu1 %1722 }
 0x20f   : > { %v1530_v11 = vadd.f32 %v1500_v29, %v1365_v26 }
 0x211   : > { %v3108_v3 = vadd.f32 %v1665_v22, %v1530_v11 }
 0x213   : > { %v1707_v30 = vmax.f32 %v3091_v0, %v3108_v3 }
 0x214   : > { %v1338_v27 = vpop.f32.mrf.mxu2 }
 0x215   : > { %v1175_v44 = vpop.f32.mrf.mxu1  ;;  %v1503_v32 = vpop.f32.mrf.mxu3  ;;  %v1366_v49 = vadd.f32 %v1338_v27, %v1201_v47 }
 0x216   : > { %v1670_v34 = vpop.f32.mrf.mxu0  ;;  %v1202_v59 = vadd.f32 %v1175_v44, %v3014_v6 }
 0x217   : > { %v1531_v54 = vadd.f32 %v1503_v32, %v1366_v49 }
 0x219   : > { %v1696_v4 = vadd.f32 %v1668_v12, %v1531_v54  ;;  %v1728_v12 = vpop.permute.xlu2 %1727  ;;  %v1733_v54 = vpop.permute.xlu0 %1732 }
 0x21c   : > { %v1340_v36 = vpop.f32.mrf.mxu2 }
 0x21d   : > { %v1178_v37 = vpop.f32.mrf.mxu1  ;;  %v1505_v38 = vpop.f32.mrf.mxu3  ;;  %v1367_v63 = vadd.f32 %v1340_v36, %v1202_v59 }
 0x21e   : > { %v1673_v41 = vpop.f32.mrf.mxu0  ;;  %v1203_v18 = vadd.f32 %v1178_v37, %v3019_v20 }
 0x21f   : > { %v1532_v15 = vadd.f32 %v1505_v38, %v1367_v63 }
 0x221   : > { %v1697_v6 = vadd.f32 %v1670_v34, %v1532_v15 }
 0x224   : > { %v1343_v40 = vpop.f32.mrf.mxu2 }
 0x225   : > { %v1180_v39 = vpop.f32.mrf.mxu1  ;;  %v1508_v42 = vpop.f32.mrf.mxu3  ;;  %v1368_v22 = vadd.f32 %v1343_v40, %v1203_v18 }
 0x226   : > { %v3112_v60 = vpop.f32.mrf.mxu0  ;;  %v1204_v32 = vadd.f32 %v1180_v39, %v3039_v31 }
 0x22c   : > { %v1345_v45 = vpop.f32.mrf.mxu2 }
 0x22d   : > { %v1183_v46 = vpop.f32.mrf.mxu1  ;;  %v1510_v48 = vpop.f32.mrf.mxu3  ;;  %v1369_v38 = vadd.f32 %v1345_v45, %v1204_v32 }
 0x22e   : > { %v1678_v50 = vpop.f32.mrf.mxu0  ;;  %v1205_v51 = vadd.f32 %v1183_v46, %v3044_v9 }
 0x22f   : > { %v1534_v35 = vadd.f32 %v1510_v48, %v1369_v38 }
 0x231   : > { %v1699_v45 = vadd.f32 %v3112_v60, %v1534_v35 }
 0x234   : > { %v1348_v52 = vpop.f32.mrf.mxu2 }
 0x235   : > { %v1370_v57 = vadd.f32 %v1348_v52, %v1205_v51  ;;  %v1185_v1 = vpop.f32.mrf.mxu1  ;;  %v1513_v58 = vpop.f32.mrf.mxu3 }
 0x236   : > { %v1206_v55 = vadd.f32 %v1185_v1, %v3067_v56  ;;  %v1680_v53 = vpop.f32.mrf.mxu0  ;;  %v1533_v56 = vadd.f32 %v1508_v42, %v1368_v22  ;;  %v1738_v1 = vpop.permute.xlu1 %1737 }
 0x237   : > { %v1535_v62 = vadd.f32 %v1513_v58, %v1370_v57 }
 0x238   : > { %v1698_v37 = vadd.f32 %v1673_v41, %v1533_v56 }
 0x239   : > { %v1700_v14 = vadd.f32 %v1678_v50, %v1535_v62 }
 0x23b   : > { %v1708_v10 = vmax.f32 %v1696_v4, %v1700_v14 }
 0x23c   : > { %v1350_v13 = vpop.f32.mrf.mxu2 }
 0x23d   : > { %v1371_v17 = vadd.f32 %v1350_v13, %v1206_v55  ;;  %v1712_v8 = vmax.f32 %v1704_v2, %v1708_v10  ;;  %v1515_v9 = vpop.f32.mrf.mxu3  ;;  %v1188_v19 = vpop.f32.mrf.mxu1 }
 0x23e   : > { %v1207_v26 = vadd.f32 %v1188_v19, %v3072_v5  ;;  %v1683_v2 = vpop.f32.mrf.mxu0 }
 0x23f   : > { %v1536_v21 = vadd.f32 %v1515_v9, %v1371_v17  ;;  %v1740_v11 = vadd.f32 %v1723_v24, %v1712_v8 }
 0x241   : > { %v1701_v7 = vadd.f32 %v1680_v53, %v1536_v21  ;;  %v1744_v40 = vmax.f32 %v1740_v11, 0.0 }
 0x243   : > { %v1709_v28 = vmax.f32 %v1697_v6, %v1701_v7 }
 0x244   : > { %v1353_v29 = vpop.f32.mrf.mxu2 }
 0x245   : > { %v1372_v27 = vadd.f32 %v1353_v29, %v1207_v26  ;;  %v1518_v44 = vpop.f32.mrf.mxu3  ;;  %v1713_v20 = vmax.f32 %v1705_v25, %v1709_v28  ;;  %v1190_v5 = vpop.f32.mrf.mxu1 }
 0x246   : > { %v1208_v47 = vadd.f32 %v1190_v5, %v3079_v61  ;;  %v1685_v39 = vpop.f32.mrf.mxu0 }
 0x247   : > { %v1537_v36 = vadd.f32 %v1518_v44, %v1372_v27  ;;  %v1741_v34 = vadd.f32 %v1728_v12, %v1713_v20 }
 0x249   : > { %v1745_v42 = vmax.f32 %v1741_v34, 0.0  ;;  %v1702_v46 = vadd.f32 %v1683_v2, %v1537_v36 }
 0x24b   : > { %v2470_v49 = vpack.c.bf16 %v1745_v42, %v1744_v40  ;;  %v1710_v50 = vmax.f32 %v1698_v37, %v1702_v46 }
 0x24c   : > { %v1355_v51 = vpop.f32.mrf.mxu2 }
 0x24d   : > { %2471 = vst [vmem:[%s235_s18] sm:$0xff] %v2470_v49   ;;  %v1373_v16 = vadd.f32 %v1355_v51, %v1208_v47  ;;  %v1714_v31 = vmax.f32 %v1706_v33, %v1710_v50  ;;  %v1520_v25 = vpop.f32.mrf.mxu3 }
 0x24f   : > { %v1538_v41 = vadd.f32 %v1520_v25, %v1373_v16  ;;  %v1742_v61 = vadd.f32 %v1733_v54, %v1714_v31 }
 0x251   : > { %v1703_v52 = vadd.f32 %v1685_v39, %v1538_v41  ;;  %v1746_v59 = vmax.f32 %v1742_v61, 0.0 }
 0x253   : > { %v1711_v57 = vmax.f32 %v1699_v45, %v1703_v52 }
 0x254   : > { %v1781_v43 = vld [vmem:[%s235_s18] sm:$0xf] (%p2609_p5)  ;;  %v1783_v23 = vld [vmem:[%s235_s18 + $0x4] sm:$0xf] (%p2609_p5) }
 0x255   : > { %v1715_v48 = vmax.f32 %v1707_v30, %v1711_v57  ;;  %1782 = vst [vmem:[%s1764_s22] sm:$0xf] (%p2609_p5), %v1781_v43 }
 0x256   : > { %1784 = vst [vmem:[%s1764_s22 + $0x8] sm:$0xf] (%p2609_p5), %v1783_v23 }
 0x257   : > { %v1743_v58 = vadd.f32 %v1738_v1, %v1715_v48 }
 0x259   : > { %v1747_v62 = vmax.f32 %v1743_v58, 0.0  ;;  %1762 = sbr.rel (!%p2609_p5) target bundleno = 615 (0x267), region = 77 }
 0x25b   : > { %v2475_v4 = vpack.c.bf16 %v1747_v62, %v1746_v59 }
 0x25d   : > { %2477 = vst [vmem:[%s235_s18 + $0x8] sm:$0xff] %v2475_v4  }
 0x264   : > { %v1785_v0 = vld [vmem:[%s235_s18 + $0x8] sm:$0xf]  ;;  %v1787_v33 = vld [vmem:[%s235_s18 + $0xc] sm:$0xf] }
 0x265   : > { %1786 = vst [vmem:[%s1764_s22 + $0x10] sm:$0xf] %v1785_v0 }
 0x266   : > { %1788 = vst [vmem:[%s1764_s22 + $0x18] sm:$0xf] %v1787_v33 }
 0x267 PF: > { %p10_p10 = scmp.ge.s32.totalorder %s2596_s16, 4   ;;  %s3156_s12 = smov %s2544_s13 }
 0x268   : > { %s3157_s13 = smov %s2607_s19  ;;  %s3158_s14 = smov %s2596_s16 }
 0x269   :  { %12 = sbr.rel (!%p10_p10) target bundleno = 2 (0x2), region = 157 }

// kernel: cnn_forward.5
= control target key start
LH: loop header
LB: loop body
LE: loop exit
PB: predicated region body
PF: predicated region fallthrough
CT: control target
= control target key end

     0   :  { %vm882_vm0 = vcmask 261120   ;;  %s2032_s1 = inlined_call_operand.vmem [shape: bf16[1568,128], index: 1, kind: input, shape index: {}]   ;;  %s2033_s2 = inlined_call_operand.vmem [shape: f32[1,128], index: 2, kind: input, shape index: {}]   ;;  %s2034_s0 = inlined_call_operand.vmem [shape: bf16[16,1568], index: 0, kind: input, shape index: {}]   ;;  %s2035_s3 = inlined_call_operand.vmem [shape: f32[16,128], index: 3, kind: output, shape index: {}]  }
   0x1   :  { %v1539_v0 = vld [vmem:[%s2032_s1 + $0x38] sm:$0xff]  ;;  %v1538_v4 = vld [vmem:[%s2032_s1 + $0x30] sm:$0xff]  ;;  %v1537_v8 = vld [vmem:[%s2032_s1 + $0x28] sm:$0xff] }
   0x2   :  { %v1555_v1 = vld [vmem:[%s2032_s1 + $0xb8] sm:$0xff]  ;;  %886 = vmatpush.bf16.msra.mxu0 %v1539_v0  ;;  %v1554_v5 = vld [vmem:[%s2032_s1 + $0xb0] sm:$0xff]  ;;  %v1553_v9 = vld [vmem:[%s2032_s1 + $0xa8] sm:$0xff] }
   0x3   :  { %v1563_v2 = vld [vmem:[%s2032_s1 + $0xf8] sm:$0xff]  ;;  %914 = vmatpush.bf16.msra.mxu2 %v1555_v1  ;;  %v1562_v6 = vld [vmem:[%s2032_s1 + $0xf0] sm:$0xff]  ;;  %v1561_v10 = vld [vmem:[%s2032_s1 + $0xe8] sm:$0xff] }
   0x4   :  { %v1547_v3 = vld [vmem:[%s2032_s1 + $0x78] sm:$0xff]  ;;  %928 = vmatpush.bf16.msra.mxu3 %v1563_v2  ;;  %v1546_v7 = vld [vmem:[%s2032_s1 + $0x70] sm:$0xff]  ;;  %v1545_v11 = vld [vmem:[%s2032_s1 + $0x68] sm:$0xff] }
   0x5   :  { %900 = vmatpush.bf16.msra.mxu1 %v1547_v3  ;;  %v1536_v12 = vld [vmem:[%s2032_s1 + $0x20] sm:$0xff]  ;;  %v1535_v16 = vld [vmem:[%s2032_s1 + $0x18] sm:$0xff]  ;;  %v1534_v20 = vld [vmem:[%s2032_s1 + $0x10] sm:$0xff] }
   0x6   :  { %887 = vmatpush.bf16.msra.mxu0 %v1538_v4  ;;  %v1552_v13 = vld [vmem:[%s2032_s1 + $0xa0] sm:$0xff]  ;;  %v1551_v17 = vld [vmem:[%s2032_s1 + $0x98] sm:$0xff]  ;;  %v1550_v21 = vld [vmem:[%s2032_s1 + $0x90] sm:$0xff] }
   0x7   :  { %915 = vmatpush.bf16.msra.mxu2 %v1554_v5  ;;  %v1560_v14 = vld [vmem:[%s2032_s1 + $0xe0] sm:$0xff]  ;;  %v1559_v18 = vld [vmem:[%s2032_s1 + $0xd8] sm:$0xff]  ;;  %v1558_v22 = vld [vmem:[%s2032_s1 + $0xd0] sm:$0xff] }
   0x8   :  { %929 = vmatpush.bf16.msra.mxu3 %v1562_v6  ;;  %v1544_v15 = vld [vmem:[%s2032_s1 + $0x60] sm:$0xff]  ;;  %v1543_v19 = vld [vmem:[%s2032_s1 + $0x58] sm:$0xff]  ;;  %v1542_v23 = vld [vmem:[%s2032_s1 + $0x50] sm:$0xff] }
   0x9   :  { %901 = vmatpush.bf16.msra.mxu1 %v1546_v7  ;;  %v1533_v24 = vld [vmem:[%s2032_s1 + $0x8] sm:$0xff]  ;;  %v1532_v28 = vld [vmem:[%s2032_s1] sm:$0xff]  ;;  %v1571_v31 = vld [vmem:[%s2032_s1 + $0x138] sm:$0xff] }
   0xa   :  { %888 = vmatpush.bf16.msra.mxu0 %v1537_v8  ;;  %v1549_v25 = vld [vmem:[%s2032_s1 + $0x88] sm:$0xff]  ;;  %v1548_v29 = vld [vmem:[%s2032_s1 + $0x80] sm:$0xff]  ;;  %v1525_v33 = vld [vmem:[%s2034_s0 + $0x30] sm:$0xf0] }
   0xb   :  { %916 = vmatpush.bf16.msra.mxu2 %v1553_v9  ;;  %v1557_v26 = vld [vmem:[%s2032_s1 + $0xc8] sm:$0xff]  ;;  %v1556_v30 = vld [vmem:[%s2032_s1 + $0xc0] sm:$0xff]  ;;  %v1587_v34 = vld [vmem:[%s2032_s1 + $0x1b8] sm:$0xff] }
   0xc   :  { %930 = vmatpush.bf16.msra.mxu3 %v1561_v10  ;;  %v1541_v27 = vld [vmem:[%s2032_s1 + $0x48] sm:$0xff]  ;;  %v1076_v32 = vld [vmem:[%s2034_s0] sm:$0xf]  ;;  %v1526_v36 = vld [vmem:[%s2034_s0 + $0x38] sm:$0xf0] }
   0xd   :  { %902 = vmatpush.bf16.msra.mxu1 %v1545_v11  ;;  %v1084_v35 = vld [vmem:[%s2034_s0 + $0x8] sm:$0xf]  ;;  %v1595_v37 = vld [vmem:[%s2032_s1 + $0x1f8] sm:$0xff]  ;;  %v1520_v38 = vld [vmem:[%s2034_s0 + $0xc] sm:$0xf]  ;;  %v1077_v41 = vor.u32 %v1525_v33, %v1076_v32 }
   0xe   :  { %889 = vmatpush.bf16.msra.mxu0 %v1536_v12  ;;  %v1086_v39 = vld [vmem:[%s2034_s0 + $0x3c] sm:$0xf0]  ;;  %v1579_v42 = vld [vmem:[%s2032_s1 + $0x178] sm:$0xff]  ;;  %v1085_v43 = vor.u32 %v1526_v36, %v1084_v35  ;;  %v1519_v44 = vld [vmem:[%s2034_s0 + $0x4] sm:$0xf] }
   0xf   :  { %917 = vmatpush.bf16.msra.mxu2 %v1552_v13  ;;  %v1540_v40 = vld [vmem:[%s2032_s1 + $0x40] sm:$0xff]  ;;  %v1078_v45 = vld [vmem:[%s2034_s0 + $0x34] sm:$0xf0]  ;;  %v1570_v46 = vld [vmem:[%s2032_s1 + $0x130] sm:$0xff]  ;;  %v1089_v47 = vor.u32 %v1520_v38, %v1086_v39 }
  0x10   :  { %931 = vmatpush.bf16.msra.mxu3 %v1560_v14  ;;  %v1586_v48 = vld [vmem:[%s2032_s1 + $0x1b0] sm:$0xff]  ;;  %v1081_v50 = vor.u32 %v1519_v44, %v1078_v45  ;;  %v1569_v52 = vld [vmem:[%s2032_s1 + $0x128] sm:$0xff]  ;;  %v1568_v56 = vld [vmem:[%s2032_s1 + $0x120] sm:$0xff] }
  0x11   :  { %903 = vmatpush.bf16.msra.mxu1 %v1544_v15  ;;  %v1594_v49 = vld [vmem:[%s2032_s1 + $0x1f0] sm:$0xff]  ;;  %v1585_v53 = vld [vmem:[%s2032_s1 + $0x1a8] sm:$0xff]  ;;  %v1584_v57 = vld [vmem:[%s2032_s1 + $0x1a0] sm:$0xff] }
  0x12   :  { %890 = vmatpush.bf16.msra.mxu0 %v1535_v16  ;;  %v1578_v51 = vld [vmem:[%s2032_s1 + $0x170] sm:$0xff]  ;;  %v1593_v54 = vld [vmem:[%s2032_s1 + $0x1e8] sm:$0xff]  ;;  %v1592_v58 = vld [vmem:[%s2032_s1 + $0x1e0] sm:$0xff] }
  0x13   :  { %918 = vmatpush.bf16.msra.mxu2 %v1551_v17  ;;  %v1577_v55 = vld [vmem:[%s2032_s1 + $0x168] sm:$0xff]  ;;  %v1576_v59 = vld [vmem:[%s2032_s1 + $0x160] sm:$0xff]  ;;  %v1567_v60 = vld [vmem:[%s2032_s1 + $0x118] sm:$0xff] }
  0x14   :  { %932 = vmatpush.bf16.msra.mxu3 %v1559_v18  ;;  %v1583_v61 = vld [vmem:[%s2032_s1 + $0x198] sm:$0xff]  ;;  %v1566_v0 = vld [vmem:[%s2032_s1 + $0x110] sm:$0xff]  ;;  %v1565_v4 = vld [vmem:[%s2032_s1 + $0x108] sm:$0xff] }
  0x15   :  { %904 = vmatpush.bf16.msra.mxu1 %v1543_v19  ;;  %v1591_v62 = vld [vmem:[%s2032_s1 + $0x1d8] sm:$0xff]  ;;  %v1582_v1 = vld [vmem:[%s2032_s1 + $0x190] sm:$0xff]  ;;  %v1581_v5 = vld [vmem:[%s2032_s1 + $0x188] sm:$0xff] }
  0x16   :  { %891 = vmatpush.bf16.msra.mxu0 %v1534_v20  ;;  %v1575_v63 = vld [vmem:[%s2032_s1 + $0x158] sm:$0xff]  ;;  %v1590_v2 = vld [vmem:[%s2032_s1 + $0x1d0] sm:$0xff]  ;;  %v1589_v6 = vld [vmem:[%s2032_s1 + $0x1c8] sm:$0xff] }
  0x17   :  { %919 = vmatpush.bf16.msra.mxu2 %v1550_v21  ;;  %v1574_v3 = vld [vmem:[%s2032_s1 + $0x150] sm:$0xff]  ;;  %v1573_v7 = vld [vmem:[%s2032_s1 + $0x148] sm:$0xff]  ;;  %v1564_v8 = vld [vmem:[%s2032_s1 + $0x100] sm:$0xff] }
  0x18   :  { %933 = vmatpush.bf16.msra.mxu3 %v1558_v22  ;;  %v1580_v9 = vld [vmem:[%s2032_s1 + $0x180] sm:$0xff]  ;;  %v1603_v11 = vld [vmem:[%s2032_s1 + $0x238] sm:$0xff]  ;;  %v1092_v13 = vld [vmem:[%s2034_s0 + $0x10] sm:$0xf] }
  0x19   :  { %905 = vmatpush.bf16.msra.mxu1 %v1542_v23  ;;  %v1588_v10 = vld [vmem:[%s2032_s1 + $0x1c0] sm:$0xff]  ;;  %v1619_v12 = vld [vmem:[%s2032_s1 + $0x2b8] sm:$0xff]  ;;  %v1528_v16 = vld [vmem:[%s2034_s0 + $0x48] sm:$0xf0] }
  0x1a   :  { %892 = vmatpush.bf16.msra.mxu0 %v1533_v24  ;;  %v1527_v14 = vld [vmem:[%s2034_s0 + $0x40] sm:$0xf0]  ;;  %v1100_v15 = vld [vmem:[%s2034_s0 + $0x18] sm:$0xf]  ;;  %v1522_v18 = vld [vmem:[%s2034_s0 + $0x1c] sm:$0xf] }
  0x1b   :  { %920 = vmatpush.bf16.msra.mxu2 %v1549_v25  ;;  %v1627_v17 = vld [vmem:[%s2032_s1 + $0x2f8] sm:$0xff]  ;;  %v1102_v19 = vld [vmem:[%s2034_s0 + $0x4c] sm:$0xf0]  ;;  %v1572_v20 = vld [vmem:[%s2032_s1 + $0x140] sm:$0xff]  ;;  %v1093_v23 = vor.u32 %v1527_v14, %v1092_v13  ;;  %v1101_v24 = vor.u32 %v1528_v16, %v1100_v15 }
  0x1c   :  { %934 = vmatpush.bf16.msra.mxu3 %v1557_v26  ;;  %v1521_v21 = vld [vmem:[%s2034_s0 + $0x14] sm:$0xf]  ;;  %v1094_v22 = vld [vmem:[%s2034_s0 + $0x44] sm:$0xf0]  ;;  %v1611_v25 = vld [vmem:[%s2032_s1 + $0x278] sm:$0xff]  ;;  %v1105_v26 = vor.u32 %v1522_v18, %v1102_v19 }
  0x1d   :  { %906 = vmatpush.bf16.msra.mxu1 %v1541_v27  ;;  %v1097_v27 = vor.u32 %v1521_v21, %v1094_v22  ;;  %v1601_v32 = vld [vmem:[%s2032_s1 + $0x228] sm:$0xff]  ;;  %v1600_v36 = vld [vmem:[%s2032_s1 + $0x220] sm:$0xff]  ;;  %v1598_v44 = vld [vmem:[%s2032_s1 + $0x210] sm:$0xff] }
  0x1e   :  { %893 = vmatpush.bf16.msra.mxu0 %v1532_v28  ;;  %v1602_v28 = vld [vmem:[%s2032_s1 + $0x230] sm:$0xff]  ;;  %v1617_v33 = vld [vmem:[%s2032_s1 + $0x2a8] sm:$0xff]  ;;  %v1624_v38 = vld [vmem:[%s2032_s1 + $0x2e0] sm:$0xff] }
  0x1f   :  { %921 = vmatpush.bf16.msra.mxu2 %v1548_v29  ;;  %v1618_v29 = vld [vmem:[%s2032_s1 + $0x2b0] sm:$0xff]  ;;  %v1609_v35 = vld [vmem:[%s2032_s1 + $0x268] sm:$0xff]  ;;  %v1608_v39 = vld [vmem:[%s2032_s1 + $0x260] sm:$0xff] }
  0x20   :  { %935 = vmatpush.bf16.msra.mxu3 %v1556_v30  ;;  %v1626_v30 = vld [vmem:[%s2032_s1 + $0x2f0] sm:$0xff] }
  0x21   :  { %907 = vmatpush.bf16.msra.mxu1 %v1540_v40  ;;  %894 = vmatmul.bf16.vlgmr.msra.gmra.mxu0 %v1077_v41  ;;  %v1599_v40 = vld [vmem:[%s2032_s1 + $0x218] sm:$0xff]  ;;  %v1614_v45 = vld [vmem:[%s2032_s1 + $0x290] sm:$0xff] }
  0x22   :  { %942 = vmatpush.bf16.msrb.mxu0 %v1571_v31  ;;  %922 = vmatmul.bf16.vlgmr.msra.gmra.mxu2 %v1085_v43  ;;  %v1610_v31 = vld [vmem:[%s2032_s1 + $0x270] sm:$0xff]  ;;  %v1615_v41 = vld [vmem:[%s2032_s1 + $0x298] sm:$0xff] }
  0x23   :  { %970 = vmatpush.bf16.msrb.mxu2 %v1587_v34  ;;  %936 = vmatmul.bf16.vlgmr.msra.gmra.mxu3 %v1089_v47  ;;  %v1625_v34 = vld [vmem:[%s2032_s1 + $0x2e8] sm:$0xff]  ;;  %v1607_v43 = vld [vmem:[%s2032_s1 + $0x258] sm:$0xff]  ;;  %v1606_v47 = vld [vmem:[%s2032_s1 + $0x250] sm:$0xff] }
  0x24   :  { %984 = vmatpush.bf16.msrb.mxu3 %v1595_v37  ;;  %908 = vmatmul.bf16.vlgmr.msra.gmra.mxu1 %v1081_v50  ;;  %v1616_v37 = vld [vmem:[%s2032_s1 + $0x2a0] sm:$0xff]  ;;  %v1621_v50 = vld [vmem:[%s2032_s1 + $0x2c8] sm:$0xff] }
  0x25   :  { %956 = vmatpush.bf16.msrb.mxu1 %v1579_v42  ;;  %v1623_v42 = vld [vmem:[%s2032_s1 + $0x2d8] sm:$0xff] }
  0x26   :  { %943 = vmatpush.bf16.msrb.mxu0 %v1570_v46  ;;  %v1622_v46 = vld [vmem:[%s2032_s1 + $0x2d0] sm:$0xff] }
  0x27   :  { %971 = vmatpush.bf16.msrb.mxu2 %v1586_v48  ;;  %v1597_v48 = vld [vmem:[%s2032_s1 + $0x208] sm:$0xff] }
  0x28   :  { %985 = vmatpush.bf16.msrb.mxu3 %v1594_v49  ;;  %v1613_v49 = vld [vmem:[%s2032_s1 + $0x288] sm:$0xff] }
  0x29   :  { %957 = vmatpush.bf16.msrb.mxu1 %v1578_v51  ;;  %v1605_v51 = vld [vmem:[%s2032_s1 + $0x248] sm:$0xff] }
  0x2a   :  { %944 = vmatpush.bf16.msrb.mxu0 %v1569_v52  ;;  %v1596_v52 = vld [vmem:[%s2032_s1 + $0x200] sm:$0xff] }
  0x2b   :  { %972 = vmatpush.bf16.msrb.mxu2 %v1585_v53  ;;  %v1612_v53 = vld [vmem:[%s2032_s1 + $0x280] sm:$0xff] }
  0x2c   :  { %986 = vmatpush.bf16.msrb.mxu3 %v1593_v54  ;;  %v1620_v54 = vld [vmem:[%s2032_s1 + $0x2c0] sm:$0xff] }
  0x2d   :  { %958 = vmatpush.bf16.msrb.mxu1 %v1577_v55  ;;  %v1108_v55 = vld [vmem:[%s2034_s0 + $0x20] sm:$0xf] }
  0x2e   :  { %945 = vmatpush.bf16.msrb.mxu0 %v1568_v56  ;;  %v1529_v56 = vld [vmem:[%s2034_s0 + $0x50] sm:$0xf0] }
  0x2f   :  { %973 = vmatpush.bf16.msrb.mxu2 %v1584_v57  ;;  %v1116_v57 = vld [vmem:[%s2034_s0 + $0x28] sm:$0xf] }
  0x30   :  { %987 = vmatpush.bf16.msrb.mxu3 %v1592_v58  ;;  %v1530_v58 = vld [vmem:[%s2034_s0 + $0x58] sm:$0xf0] }
  0x31   :  { %959 = vmatpush.bf16.msrb.mxu1 %v1576_v59  ;;  %v1524_v59 = vld [vmem:[%s2034_s0 + $0x2c] sm:$0xf] }
  0x32   :  { %946 = vmatpush.bf16.msrb.mxu0 %v1567_v60  ;;  %v1118_v60 = vld [vmem:[%s2034_s0 + $0x5c] sm:$0xf0] }
  0x33   :  { %974 = vmatpush.bf16.msrb.mxu2 %v1583_v61  ;;  %v1629_v61 = vld [vmem:[%s2032_s1 + $0x308] sm:$0xff] }
  0x34   :  { %988 = vmatpush.bf16.msrb.mxu3 %v1591_v62  ;;  %v1604_v62 = vld [vmem:[%s2032_s1 + $0x240] sm:$0xff] }
  0x35   :  { %960 = vmatpush.bf16.msrb.mxu1 %v1575_v63  ;;  %v1109_v63 = vor.u32 %v1529_v56, %v1108_v55 }
  0x36   :  { %947 = vmatpush.bf16.msrb.mxu0 %v1566_v0  ;;  %v1523_v0 = vld [vmem:[%s2034_s0 + $0x24] sm:$0xf] }
  0x37   :  { %975 = vmatpush.bf16.msrb.mxu2 %v1582_v1  ;;  %v1110_v1 = vld [vmem:[%s2034_s0 + $0x54] sm:$0xf0] }
  0x38   :  { %989 = vmatpush.bf16.msrb.mxu3 %v1590_v2  ;;  %v1117_v2 = vor.u32 %v1530_v58, %v1116_v57 }
  0x39   :  { %961 = vmatpush.bf16.msrb.mxu1 %v1574_v3  ;;  %v1121_v3 = vor.u32 %v1524_v59, %v1118_v60 }
  0x3a   :  { %948 = vmatpush.bf16.msrb.mxu0 %v1565_v4  ;;  %v1113_v4 = vor.u32 %v1523_v0, %v1110_v1 }
  0x3b   :  { %976 = vmatpush.bf16.msrb.mxu2 %v1581_v5  ;;  %v1628_v5 = vld [vmem:[%s2032_s1 + $0x300] sm:$0xff] }
  0x3c   :  { %990 = vmatpush.bf16.msrb.mxu3 %v1589_v6  ;;  %v1124_v6 = vld [vmem:[%s2034_s0 + $0x30] sm:$0xf] }
  0x3d   :  { %962 = vmatpush.bf16.msrb.mxu1 %v1573_v7  ;;  %v1531_v7 = vld [vmem:[%s2034_s0 + $0x60] sm:$0xf0] }
  0x3e   :  { %949 = vmatpush.bf16.msrb.mxu0 %v1564_v8  ;;  %v1125_v8 = vor.u32 %v1531_v7, %v1124_v6 }
  0x3f   :  { %977 = vmatpush.bf16.msrb.mxu2 %v1580_v9 }
  0x40   :  { %991 = vmatpush.bf16.msrb.mxu3 %v1588_v10 }
  0x41   :  { %963 = vmatpush.bf16.msrb.mxu1 %v1572_v20  ;;  %950 = vmatmul.bf16.vlgmr.msrb.gmra.mxu0 %v1093_v23 }
  0x42   :  { %998 = vmatpush.bf16.msra.mxu0 %v1603_v11  ;;  %978 = vmatmul.bf16.vlgmr.msrb.gmra.mxu2 %v1101_v24 }
  0x43   :  { %1026 = vmatpush.bf16.msra.mxu2 %v1619_v12  ;;  %992 = vmatmul.bf16.vlgmr.msrb.gmra.mxu3 %v1105_v26  ;;  %v1630_v12 = vld [vmem:[%s2033_s2] ss:$0 sm:$0xff] }
  0x44   :  { %1040 = vmatpush.bf16.msra.mxu3 %v1627_v17  ;;  %964 = vmatmul.bf16.vlgmr.msrb.gmra.mxu1 %v1097_v27 }
  0x45   :  { %1012 = vmatpush.bf16.msra.mxu1 %v1611_v25 }
  0x46   :  { %999 = vmatpush.bf16.msra.mxu0 %v1602_v28 }
  0x47   :  { %1027 = vmatpush.bf16.msra.mxu2 %v1618_v29 }
  0x48   :  { %1041 = vmatpush.bf16.msra.mxu3 %v1626_v30 }
  0x49   :  { %1013 = vmatpush.bf16.msra.mxu1 %v1610_v31 }
  0x4a   :  { %1000 = vmatpush.bf16.msra.mxu0 %v1601_v32 }
  0x4b   :  { %1028 = vmatpush.bf16.msra.mxu2 %v1617_v33 }
  0x4c   :  { %1042 = vmatpush.bf16.msra.mxu3 %v1625_v34 }
  0x4d   :  { %1014 = vmatpush.bf16.msra.mxu1 %v1609_v35 }
  0x4e   :  { %1001 = vmatpush.bf16.msra.mxu0 %v1600_v36 }
  0x4f   :  { %1029 = vmatpush.bf16.msra.mxu2 %v1616_v37 }
  0x50   :  { %1043 = vmatpush.bf16.msra.mxu3 %v1624_v38 }
  0x51   :  { %1015 = vmatpush.bf16.msra.mxu1 %v1608_v39 }
  0x52   :  { %1002 = vmatpush.bf16.msra.mxu0 %v1599_v40 }
  0x53   :  { %1030 = vmatpush.bf16.msra.mxu2 %v1615_v41 }
  0x54   :  { %1044 = vmatpush.bf16.msra.mxu3 %v1623_v42 }
  0x55   :  { %1016 = vmatpush.bf16.msra.mxu1 %v1607_v43 }
  0x56   :  { %1003 = vmatpush.bf16.msra.mxu0 %v1598_v44 }
  0x57   :  { %1031 = vmatpush.bf16.msra.mxu2 %v1614_v45 }
  0x58   :  { %1045 = vmatpush.bf16.msra.mxu3 %v1622_v46 }
  0x59   :  { %1017 = vmatpush.bf16.msra.mxu1 %v1606_v47 }
  0x5a   :  { %1004 = vmatpush.bf16.msra.mxu0 %v1597_v48 }
  0x5b   :  { %1032 = vmatpush.bf16.msra.mxu2 %v1613_v49 }
  0x5c   :  { %1046 = vmatpush.bf16.msra.mxu3 %v1621_v50 }
  0x5d   :  { %1018 = vmatpush.bf16.msra.mxu1 %v1605_v51 }
  0x5e   :  { %1005 = vmatpush.bf16.msra.mxu0 %v1596_v52 }
  0x5f   :  { %1033 = vmatpush.bf16.msra.mxu2 %v1612_v53 }
  0x60   :  { %1047 = vmatpush.bf16.msra.mxu3 %v1620_v54 }
  0x61   :  { %1019 = vmatpush.bf16.msra.mxu1 %v1604_v62  ;;  %1006 = vmatmul.bf16.vlgmr.msra.gmra.mxu0 %v1109_v63 }
  0x62   :  { %1060 = vmatpush.bf16.msrb.mxu0 %v1629_v61  ;;  %1034 = vmatmul.bf16.vlgmr.msra.gmra.mxu2 %v1117_v2 }
  0x63   :  { %1048 = vmatmul.bf16.vlgmr.msra.gmra.mxu3 %v1121_v3 }
  0x64   :  { %1020 = vmatmul.bf16.vlgmr.msra.gmra.mxu1 %v1113_v4 }
  0x66   :  { %1061 = vmatpush.bf16.msrb.mxu0 %v1628_v5 }
  0x71   :  { %1518 = vmatmul.msk.bf16.vlgmr.msrb.gmra.mxu0 %vm882_vm0, %v1125_v8 }
  0x9e   :  { %v895_v9 = vpop.f32.mrf.mxu0 }
  0x9f   :  { %v896_v15 = vadd.f32 %v1630_v12, %v895_v9 }
  0xa1   :  { %v909_v10 = vpop.f32.mrf.mxu1 }
  0xa2   :  { %v910_v17 = vadd.f32 %v909_v10, %v896_v15 }
  0xa5   :  { %v923_v11 = vpop.f32.mrf.mxu2 }
  0xa6   :  { %v897_v13 = vpop.f32.mrf.mxu0  ;;  %v937_v14 = vpop.f32.mrf.mxu3  ;;  %v924_v20 = vadd.f32 %v923_v11, %v910_v17 }
  0xa7   :  { %v898_v23 = vadd.f32 %v1630_v12, %v897_v13 }
  0xa8   :  { %v938_v24 = vadd.f32 %v937_v14, %v924_v20 }
  0xa9   :  { %v911_v16 = vpop.f32.mrf.mxu1 }
  0xaa   :  { %v912_v26 = vadd.f32 %v911_v16, %v898_v23 }
  0xad   :  { %v925_v18 = vpop.f32.mrf.mxu2 }
  0xae   :  { %v939_v21 = vpop.f32.mrf.mxu3  ;;  %v926_v30 = vadd.f32 %v925_v18, %v912_v26 }
  0xb0   :  { %v940_v33 = vadd.f32 %v939_v21, %v926_v30 }
  0xbe   :  { %v951_v19 = vpop.f32.mrf.mxu0 }
  0xbf   :  { %v952_v27 = vadd.f32 %v951_v19, %v938_v24 }
  0xc1   :  { %v965_v22 = vpop.f32.mrf.mxu1 }
  0xc2   :  { %v966_v31 = vadd.f32 %v965_v22, %v952_v27 }
  0xc5   :  { %v979_v25 = vpop.f32.mrf.mxu2 }
  0xc6   :  { %v953_v28 = vpop.f32.mrf.mxu0  ;;  %v993_v29 = vpop.f32.mrf.mxu3  ;;  %v980_v34 = vadd.f32 %v979_v25, %v966_v31 }
  0xc7   :  { %v954_v37 = vadd.f32 %v953_v28, %v940_v33 }
  0xc8   :  { %v994_v38 = vadd.f32 %v993_v29, %v980_v34 }
  0xc9   :  { %v967_v32 = vpop.f32.mrf.mxu1 }
  0xca   :  { %v968_v41 = vadd.f32 %v967_v32, %v954_v37 }
  0xcd   :  { %v981_v35 = vpop.f32.mrf.mxu2 }
  0xce   :  { %v995_v39 = vpop.f32.mrf.mxu3  ;;  %v982_v43 = vadd.f32 %v981_v35, %v968_v41 }
  0xd0   :  { %v996_v47 = vadd.f32 %v995_v39, %v982_v43 }
  0xde   :  { %v1007_v36 = vpop.f32.mrf.mxu0 }
  0xdf   :  { %v1008_v42 = vadd.f32 %v1007_v36, %v994_v38 }
  0xe1   :  { %v1021_v40 = vpop.f32.mrf.mxu1 }
  0xe2   :  { %v1022_v46 = vadd.f32 %v1021_v40, %v1008_v42 }
  0xe5   :  { %v1035_v44 = vpop.f32.mrf.mxu2 }
  0xe6   :  { %v1009_v45 = vpop.f32.mrf.mxu0  ;;  %v1036_v48 = vadd.f32 %v1035_v44, %v1022_v46  ;;  %v1049_v49 = vpop.f32.mrf.mxu3 }
  0xe7   :  { %v1010_v50 = vadd.f32 %v1009_v45, %v996_v47 }
  0xe8   :  { %v1050_v52 = vadd.f32 %v1049_v49, %v1036_v48 }
  0xe9   :  { %v1023_v51 = vpop.f32.mrf.mxu1 }
  0xea   :  { %v1024_v55 = vadd.f32 %v1023_v51, %v1010_v50 }
  0xed   :  { %v1037_v53 = vpop.f32.mrf.mxu2 }
  0xee   :  { %v1063_v54 = vpop.f32.mrf.mxu0  ;;  %v1038_v57 = vadd.f32 %v1037_v53, %v1024_v55  ;;  %v1051_v58 = vpop.f32.mrf.mxu3 }
  0xef   :  { %v1064_v56 = vadd.f32 %v1063_v54, %v1050_v52 }
  0xf0   :  { %v1052_v59 = vadd.f32 %v1051_v58, %v1038_v57 }
  0xf1   :  { %1068 = vst [vmem:[%s2035_s3] sm:$0xff] %v1064_v56 }
  0xf6   :  { %v1065_v60 = vpop.f32.mrf.mxu0 }
  0xf7   :  { %v1066_v61 = vadd.f32 %v1065_v60, %v1052_v59 }
  0xf9   :  { %1069 = vst [vmem:[%s2035_s3 + $0x8] sm:$0xff] %v1066_v61 }

</bundles_post_ra>
